<compile_context>
chip_gen: v5e
topology: v5e:2x2
jax: 0.10.0
libtpu: 0.0.40
codegen_flags: <defaults>
</compile_context>

<pallas_src>
import functools
import math

import jax
import jax.numpy as jnp
from jax import lax
from jax.experimental import pallas as pl
from jax.experimental.pallas import tpu as pltpu

F32 = jnp.float32
HEAD_PAD = 128   # lane-dense combined (O | F) output width


# ------------------------------------------------------------------ in-kernel helpers ----
def _row_interleave(blocks):
    """blocks: r arrays of shape (n, w).  Returns (r*n, w) with out[i*r + j] = blocks[j][i],
    built with permutation-matrix matmuls (no in-kernel reshape/transpose needed)."""
    r = len(blocks)
    if r == 1:
        return blocks[0]
    n = blocks[0].shape[0]
    ki = lax.broadcasted_iota(jnp.int32, (r * n, n), 0)
    ii = lax.broadcasted_iota(jnp.int32, (r * n, n), 1)
    out = None
    for j, blk in enumerate(blocks):
        ej = jnp.where(ki == ii * r + j, 1.0, 0.0)          # (r*n, n) one-hot
        term = jnp.dot(ej, blk, preferred_element_type=F32)
        out = term if out is None else out + term
    return out


def _rechunk_rows(x, row_width):
    """torch.reshape(x (a, b), (-1, row_width)): a row-major re-chunk (NOT a transpose),
    reproduced with row-interleave permutation matmuls."""
    a, b = x.shape
    out_rows = (a * b) // row_width
    if a == out_rows and b == row_width:
        return x                                            # identity re-chunk
    if b % row_width == 0:
        r = b // row_width
        return _row_interleave(
            [x[:, j * row_width:(j + 1) * row_width] for j in range(r)])
    # TODO(synk): general row-major re-chunk when row_width does not divide the lane dim.
    return jnp.reshape(x, (out_rows, row_width))


def _bilinear_cm(z_c_hw, x, y, h, w):
    """Bilinear sample of z (c, H*W) at the M points given by (M, 1) float coordinate
    columns x, y.  Returns the channel-major (c, M) result (torch's pre-reshape layout),
    computed with ONE weighted-scatter MXU matmul (no data-dependent gather)."""
    m = x.shape[0]
    hw = z_c_hw.shape[1]
    x1 = x.astype(jnp.int32)                # trunc toward zero, like torch .int()
    y1 = y.astype(jnp.int32)
    x2 = jnp.clip(x1 + 1, 0, h - 1)
    y2 = jnp.clip(y1 + 1, 0, w - 1)
    x1 = jnp.clip(x1, 0, h - 1)
    y1 = jnp.clip(y1, 0, w - 1)
    dx = x - x1.astype(F32)                 # matches torch: delta vs the clipped corner
    dy = y - y1.astype(F32)
    w11 = (1.0 - dx) * (1.0 - dy)
    w21 = dx * (1.0 - dy)
    w12 = (1.0 - dx) * dy
    w22 = dx * dy
    lane = lax.broadcasted_iota(jnp.int32, (m, hw), 1)

    def scat(xi, yi, wt):                   # weighted one-hot row per point
        return jnp.where(lane == xi * w + yi, wt, 0.0)

    s = (scat(x1, y1, w11) + scat(x2, y1, w21)
         + scat(x1, y2, w12) + scat(x2, y2, w22))           # (M, HW)
    return lax.dot_general(z_c_hw, s, (((1,), (1,)), ((), ())),
                           preferred_element_type=F32)      # (c, M)


# --------------------------------------------------------------------------- kernel ----
def _decoder_kernel(q_ref, z_ref,
                    ow1, ob1, ow2, ob2, owr1, obr1, owr2, obr2, ow3, ob3,
                    fa1_w, fa1_b, fa2_w, fa2_b,
                    wq_h, bq_h, wk_h, bk_h, wv_h, bv_h, wo_h, bo,
                    oc1_w, oc1_b, oc2_w, oc2_b, ocr1_w, ocr1_b, ocr2_w, ocr2_b,
                    head_w, head_b,
                    out_ref, *, h, w):
    c = z_ref.shape[0]
    n = q_ref.shape[0]
    k_pts = ob3.shape[1] // 2
    num_heads = wq_h.shape[0]
    d = wq_h.shape[2]
    e = wo_h.shape[2]

    q_pts = q_ref[...]                      # (N, 3)
    z = z_ref[...]                          # (c, H*W)

    # ---------------- OffsetPrediction ----------------
    qxy_cm = _bilinear_cm(z, q_pts[:, 0:1], q_pts[:, 1:2], h, w)      # (c, N)
    q_z = _rechunk_rows(qxy_cm, c)                                    # (N, c)   torch reshape(-1, c)
    q1 = jnp.dot(q_pts, ow1[...], preferred_element_type=F32) + ob1[...]
    q2 = jnp.dot(q_z, ow2[...], preferred_element_type=F32) + ob2[...]
    s = q1 + q2
    t_ = jnp.dot(s, owr1[...], preferred_element_type=F32) + obr1[...] + s
    t_ = jnp.dot(t_, owr2[...], preferred_element_type=F32) + obr2[...]
    t_ = jnp.maximum(t_, 0.0)
    delta = jnp.dot(t_, ow3[...], preferred_element_type=F32) + ob3[...]   # (N, 2K)
    q_xy = q_pts[:, 0:2]
    rflat = _row_interleave(
        [q_xy + delta[:, 2 * j:2 * j + 2] for j in range(k_pts)])    # (N*K, 2)

    # ---------------- second gather (FeatureAggregation) ----------------
    zr_cm = _bilinear_cm(z, rflat[:, 0:1], rflat[:, 1:2], h, w)      # (c, N*K)
    zr = _rechunk_rows(zr_cm, c)                                     # (N*K, c)

    r_lin = jnp.dot(rflat, fa1_w[...], preferred_element_type=F32) + fa1_b[...]   # (NK, h2)
    q_lin = jnp.dot(q_pts, fa2_w[...], preferred_element_type=F32) + fa2_b[...]   # (N,  h2)

    # ---------------- multi-head attention ----------------
    # query = [q_z | q_lin], key = value = [zr | r_lin]; concat folded into split-weight matmuls.
    scale = 1.0 / math.sqrt(d)
    attn = jnp.zeros((n, e), F32) + bo[...]                          # out-proj bias
    for hd in range(num_heads):
        wq = wq_h[hd]                                                # (c+h2, d)
        wk = wk_h[hd]
        wv = wv_h[hd]
        qh = (jnp.dot(q_z, wq[:c, :], preferred_element_type=F32)
              + jnp.dot(q_lin, wq[c:, :], preferred_element_type=F32) + bq_h[hd])
        kh = (jnp.dot(zr, wk[:c, :], preferred_element_type=F32)
              + jnp.dot(r_lin, wk[c:, :], preferred_element_type=F32) + bk_h[hd])
        vh = (jnp.dot(zr, wv[:c, :], preferred_element_type=F32)
              + jnp.dot(r_lin, wv[c:, :], preferred_element_type=F32) + bv_h[hd])
        sc = lax.dot_general(qh, kh, (((1,), (1,)), ((), ())),
                             preferred_element_type=F32) * scale     # (N, NK)
        sc = sc - jnp.max(sc, axis=-1, keepdims=True)
        ex = jnp.exp(sc)
        p = ex * pl.reciprocal(jnp.sum(ex, axis=-1, keepdims=True), approx=True)
        oh = jnp.dot(p, vh, preferred_element_type=F32)              # (N, d)
        attn = attn + jnp.dot(oh, wo_h[hd], preferred_element_type=F32)

    # ---------------- OccupancyFlow ----------------
    # z = [q_z | attn] folded into split-weight linear1.
    z1 = (jnp.dot(q_z, oc1_w[:c, :], preferred_element_type=F32)
          + jnp.dot(attn, oc1_w[c:, :], preferred_element_type=F32) + oc1_b[...])
    q_occ = jnp.dot(q_pts, oc2_w[...], preferred_element_type=F32) + oc2_b[...]
    of = z1 + q_occ
    for _ in range(3):                      # reference re-applies the SAME ResidualLayer 3x
        tmp = jnp.dot(of, ocr1_w[...], preferred_element_type=F32) + ocr1_b[...] + of
        of = jnp.dot(tmp, ocr2_w[...], preferred_element_type=F32) + ocr2_b[...]
    of = jnp.maximum(of, 0.0)
    # merged, lane-padded heads: col 0 = O, cols 1:3 = F, rest zero -> single unmasked store.
    out_ref[...] = jnp.dot(of, head_w[...], preferred_element_type=F32) + head_b[...]


# -------------------------------------------------------------------------- wrapper ----
def decoder_forward(Z, Q, params, *, num_heads):
    # TODO(synk): for production-scale N, tile points over a grid (weight-resident BlockSpecs,
    # flash-style online-softmax over keys, bf16 MXU operands); whole-problem-in-VMEM is
    # intentional at this toy size.
    c, H, W = Z.shape
    N = Q.shape[0]

    def t(wm):
        return jnp.asarray(wm, F32).T                        # (out, in) -> (in, out)

    def b2d(b):
        return jnp.asarray(b, F32).reshape(1, -1)

    ops = [jnp.asarray(Q, F32), jnp.asarray(Z, F32).reshape(c, H * W)]
    for name in ("off_l1", "off_l2", "off_r1", "off_r2", "off_l3", "fa_l1", "fa_l2"):
        wm, b = params[name]
        ops += [t(wm), b2d(b)]

    # per-head split of MHA in/out projections (host-side, free)
    w_in = jnp.asarray(params["mha_in_w"], F32)              # (3E, E) rows = [Wq; Wk; Wv]
    b_in = jnp.asarray(params["mha_in_b"], F32)
    E = w_in.shape[1]
    d = E // num_heads
    for i in range(3):
        blk = w_in[i * E:(i + 1) * E]                        # (E_out, E_in)
        ops.append(blk.T.reshape(E, num_heads, d).transpose(1, 0, 2))   # (heads, E_in, d)
        ops.append(b_in[i * E:(i + 1) * E].reshape(num_heads, 1, d))
    wo, bo = params["mha_out"]
    ops.append(t(wo).reshape(num_heads, d, E))               # (heads, d, E)
    ops.append(b2d(bo))

    for name in ("oc_l1", "oc_l2", "oc_r1", "oc_r2"):
        wm, b = params[name]
        ops += [t(wm), b2d(b)]

    # merged + lane-padded output head: col 0 = occupancy, cols 1:3 = flow
    w3, b3 = params["oc_l3"]
    w4, b4 = params["oc_l4"]
    h4 = w3.shape[1]
    head_w = jnp.zeros((h4, HEAD_PAD), F32)
    head_w = head_w.at[:, 0:1].set(t(w3)).at[:, 1:3].set(t(w4))
    head_b = jnp.zeros((1, HEAD_PAD), F32)
    head_b = head_b.at[:, 0:1].set(b2d(b3)).at[:, 1:3].set(b2d(b4))
    ops += [head_w, head_b]

    vmem = pl.BlockSpec(memory_space=pltpu.MemorySpace.VMEM)
    kernel = functools.partial(_decoder_kernel, h=H, w=W)
    out = pl.pallas_call(
        kernel,
        out_shape=jax.ShapeDtypeStruct((N, HEAD_PAD), F32),
        in_specs=[vmem] * len(ops),
        out_specs=vmem,
    )(*ops)
    return out[:, 0:1], out[:, 1:3]


# ----------------------------------------------------------------------------- init ----
def init_params(key, in_channel, h1, h2, h3, h4):
    def lin(k, out_f, in_f):
        kw, kb = jax.random.split(k)
        W = jax.random.normal(kw, (out_f, in_f), F32) * 0.1
        b = jax.random.normal(kb, (out_f,), F32) * 0.01
        return W, b

    keys = jax.random.split(key, 16)
    p = {}
    # OffsetPrediction(in_channel, hidden_channel=h1, K=2)
    p["off_l1"] = lin(keys[0], h1, 3)
    p["off_l2"] = lin(keys[1], h1, in_channel)
    p["off_r1"] = lin(keys[2], h1, h1)
    p["off_r2"] = lin(keys[3], h1, h1)
    p["off_l3"] = lin(keys[4], 2 * 2, h1)
    # FeatureAggregation(h2, h3, attn_embed_dim=h3, attn_num_heads)
    p["fa_l1"] = lin(keys[5], h2, 2)
    p["fa_l2"] = lin(keys[6], h2, 3)
    p["mha_in_w"] = jax.random.normal(keys[7], (3 * h3, h3), F32) * 0.1
    p["mha_in_b"] = jax.random.normal(keys[8], (3 * h3,), F32) * 0.01
    p["mha_out"] = lin(keys[9], h3, h3)
    # OccupancyFlow(in_channel, h3, h4)
    p["oc_l1"] = lin(keys[10], h4, in_channel + h3)
    p["oc_l2"] = lin(keys[11], h4, 3)
    p["oc_r1"] = lin(keys[12], h4, h4)
    p["oc_r2"] = lin(keys[13], h4, h4)
    p["oc_l3"] = lin(keys[14], 1, h4)
    p["oc_l4"] = lin(keys[15], 2, h4)
    return p


# ----------------------------------------------------------------------------- main ----
if __name__ == "__main__":
    in_channel, h1, h2, h3, h4, heads = 8, 16, 8, 16, 32, 2
    # MultiheadAttention dims require query/key feature dim == h3 == in_channel + h2
    assert h3 == in_channel + h2 and h3 % heads == 0
    N, Hs, Ws = 8, 16, 16

    key = jax.random.PRNGKey(0)
    kz, kq, kp = jax.random.split(key, 3)
    Z = jax.random.normal(kz, (in_channel, Hs, Ws), F32)
    Q = jax.random.uniform(kq, (N, 3), F32) * jnp.array([Hs - 1.0, Ws - 1.0, 1.0], F32)
    params = init_params(kp, in_channel, h1, h2, h3, h4)

    fwd = jax.jit(decoder_forward, static_argnames=("num_heads",))
    O, Fl = fwd(Z, Q, params, num_heads=heads)
    jax.block_until_ready((O, Fl))

    assert O.shape == (N, 1) and Fl.shape == (N, 2)
    assert bool(jnp.all(jnp.isfinite(O))) and bool(jnp.all(jnp.isfinite(Fl)))
    print("KERNEL_OK")
</pallas_src>

<mosaic_0001>
module attributes {stable_mosaic.version = 11 : i64} {
  func.func @_decoder_kernel(%arg0: memref<8x3xf32, #tpu.memory_space<vmem>>, %arg1: memref<8x256xf32, #tpu.memory_space<vmem>>, %arg2: memref<3x16xf32, #tpu.memory_space<vmem>>, %arg3: memref<1x16xf32, #tpu.memory_space<vmem>>, %arg4: memref<8x16xf32, #tpu.memory_space<vmem>>, %arg5: memref<1x16xf32, #tpu.memory_space<vmem>>, %arg6: memref<16x16xf32, #tpu.memory_space<vmem>>, %arg7: memref<1x16xf32, #tpu.memory_space<vmem>>, %arg8: memref<16x16xf32, #tpu.memory_space<vmem>>, %arg9: memref<1x16xf32, #tpu.memory_space<vmem>>, %arg10: memref<16x4xf32, #tpu.memory_space<vmem>>, %arg11: memref<1x4xf32, #tpu.memory_space<vmem>>, %arg12: memref<2x8xf32, #tpu.memory_space<vmem>>, %arg13: memref<1x8xf32, #tpu.memory_space<vmem>>, %arg14: memref<3x8xf32, #tpu.memory_space<vmem>>, %arg15: memref<1x8xf32, #tpu.memory_space<vmem>>, %arg16: memref<2x16x8xf32, #tpu.memory_space<vmem>>, %arg17: memref<2x1x8xf32, #tpu.memory_space<vmem>>, %arg18: memref<2x16x8xf32, #tpu.memory_space<vmem>>, %arg19: memref<2x1x8xf32, #tpu.memory_space<vmem>>, %arg20: memref<2x16x8xf32, #tpu.memory_space<vmem>>, %arg21: memref<2x1x8xf32, #tpu.memory_space<vmem>>, %arg22: memref<2x8x16xf32, #tpu.memory_space<vmem>>, %arg23: memref<1x16xf32, #tpu.memory_space<vmem>>, %arg24: memref<24x32xf32, #tpu.memory_space<vmem>>, %arg25: memref<1x32xf32, #tpu.memory_space<vmem>>, %arg26: memref<3x32xf32, #tpu.memory_space<vmem>>, %arg27: memref<1x32xf32, #tpu.memory_space<vmem>>, %arg28: memref<32x32xf32, #tpu.memory_space<vmem>>, %arg29: memref<1x32xf32, #tpu.memory_space<vmem>>, %arg30: memref<32x32xf32, #tpu.memory_space<vmem>>, %arg31: memref<1x32xf32, #tpu.memory_space<vmem>>, %arg32: memref<32x128xf32, #tpu.memory_space<vmem>>, %arg33: memref<1x128xf32, #tpu.memory_space<vmem>>, %arg34: memref<8x128xf32, #tpu.memory_space<vmem>>) attributes {dimension_semantics = [], scalar_prefetch = 0 : i64, scratch_operands = 0 : i64, tpu.core_type = #tpu.core_type<tc>} {
    %c0 = arith.constant 0 : index
    %c0_0 = arith.constant 0 : index
    %0 = vector.load %arg0[%c0, %c0_0] : memref<8x3xf32, #tpu.memory_space<vmem>>, vector<8x3xf32>
    %c0_1 = arith.constant 0 : index
    %c0_2 = arith.constant 0 : index
    %1 = vector.load %arg1[%c0_1, %c0_2] : memref<8x256xf32, #tpu.memory_space<vmem>>, vector<8x256xf32>
    %2 = vector.extract_strided_slice %0 {offsets = [0, 0], sizes = [8, 1], strides = [1, 1]} : vector<8x3xf32> to vector<8x1xf32>
    %3 = vector.extract_strided_slice %0 {offsets = [0, 1], sizes = [8, 1], strides = [1, 1]} : vector<8x3xf32> to vector<8x1xf32>
    %4 = arith.fptosi %2 : vector<8x1xf32> to vector<8x1xi32>
    %5 = arith.fptosi %3 : vector<8x1xf32> to vector<8x1xi32>
    %c1_i32 = arith.constant 1 : i32
    %6 = vector.broadcast %c1_i32 : i32 to vector<8x1xi32>
    %7 = arith.addi %4, %6 : vector<8x1xi32>
    %c0_i32 = arith.constant 0 : i32
    %c15_i32 = arith.constant 15 : i32
    %8 = vector.broadcast %c0_i32 : i32 to vector<8x1xi32>
    %9 = arith.maxsi %8, %7 : vector<8x1xi32>
    %10 = vector.broadcast %c15_i32 : i32 to vector<8x1xi32>
    %11 = arith.minsi %10, %9 : vector<8x1xi32>
    %c1_i32_3 = arith.constant 1 : i32
    %12 = vector.broadcast %c1_i32_3 : i32 to vector<8x1xi32>
    %13 = arith.addi %5, %12 : vector<8x1xi32>
    %c0_i32_4 = arith.constant 0 : i32
    %c15_i32_5 = arith.constant 15 : i32
    %14 = vector.broadcast %c0_i32_4 : i32 to vector<8x1xi32>
    %15 = arith.maxsi %14, %13 : vector<8x1xi32>
    %16 = vector.broadcast %c15_i32_5 : i32 to vector<8x1xi32>
    %17 = arith.minsi %16, %15 : vector<8x1xi32>
    %c0_i32_6 = arith.constant 0 : i32
    %c15_i32_7 = arith.constant 15 : i32
    %18 = vector.broadcast %c0_i32_6 : i32 to vector<8x1xi32>
    %19 = arith.maxsi %18, %4 : vector<8x1xi32>
    %20 = vector.broadcast %c15_i32_7 : i32 to vector<8x1xi32>
    %21 = arith.minsi %20, %19 : vector<8x1xi32>
    %c0_i32_8 = arith.constant 0 : i32
    %c15_i32_9 = arith.constant 15 : i32
    %22 = vector.broadcast %c0_i32_8 : i32 to vector<8x1xi32>
    %23 = arith.maxsi %22, %5 : vector<8x1xi32>
    %24 = vector.broadcast %c15_i32_9 : i32 to vector<8x1xi32>
    %25 = arith.minsi %24, %23 : vector<8x1xi32>
    %26 = arith.sitofp %21 : vector<8x1xi32> to vector<8x1xf32>
    %27 = arith.subf %2, %26 : vector<8x1xf32>
    %28 = arith.sitofp %25 : vector<8x1xi32> to vector<8x1xf32>
    %29 = arith.subf %3, %28 : vector<8x1xf32>
    %cst = arith.constant 1.000000e+00 : f32
    %30 = vector.broadcast %cst : f32 to vector<8x1xf32>
    %31 = arith.subf %30, %27 : vector<8x1xf32>
    %cst_10 = arith.constant 1.000000e+00 : f32
    %32 = vector.broadcast %cst_10 : f32 to vector<8x1xf32>
    %33 = arith.subf %32, %29 : vector<8x1xf32>
    %34 = arith.mulf %31, %33 : vector<8x1xf32>
    %cst_11 = arith.constant 1.000000e+00 : f32
    %35 = vector.broadcast %cst_11 : f32 to vector<8x1xf32>
    %36 = arith.subf %35, %29 : vector<8x1xf32>
    %37 = arith.mulf %27, %36 : vector<8x1xf32>
    %cst_12 = arith.constant 1.000000e+00 : f32
    %38 = vector.broadcast %cst_12 : f32 to vector<8x1xf32>
    %39 = arith.subf %38, %27 : vector<8x1xf32>
    %40 = arith.mulf %39, %29 : vector<8x1xf32>
    %41 = arith.mulf %27, %29 : vector<8x1xf32>
    %42 = tpu.iota {dimensions = array<i32: 1>} : vector<8x256xi32>
    %c16_i32 = arith.constant 16 : i32
    %43 = vector.broadcast %c16_i32 : i32 to vector<8x1xi32>
    %44 = arith.muli %21, %43 : vector<8x1xi32>
    %45 = arith.addi %44, %25 : vector<8x1xi32>
    %46 = vector.broadcast %45 : vector<8x1xi32> to vector<8x256xi32>
    %47 = arith.cmpi eq, %42, %46 : vector<8x256xi32>
    %cst_13 = arith.constant 0.000000e+00 : f32
    %48 = vector.shape_cast %34 : vector<8x1xf32> to vector<8x1xf32>
    %49 = vector.broadcast %48 : vector<8x1xf32> to vector<8x256xf32>
    %50 = vector.broadcast %cst_13 : f32 to vector<8x256xf32>
    %51 = arith.select %47, %49, %50 : vector<8x256xi1>, vector<8x256xf32>
    %c16_i32_14 = arith.constant 16 : i32
    %52 = vector.broadcast %c16_i32_14 : i32 to vector<8x1xi32>
    %53 = arith.muli %11, %52 : vector<8x1xi32>
    %54 = arith.addi %53, %25 : vector<8x1xi32>
    %55 = vector.broadcast %54 : vector<8x1xi32> to vector<8x256xi32>
    %56 = arith.cmpi eq, %42, %55 : vector<8x256xi32>
    %cst_15 = arith.constant 0.000000e+00 : f32
    %57 = vector.shape_cast %37 : vector<8x1xf32> to vector<8x1xf32>
    %58 = vector.broadcast %57 : vector<8x1xf32> to vector<8x256xf32>
    %59 = vector.broadcast %cst_15 : f32 to vector<8x256xf32>
    %60 = arith.select %56, %58, %59 : vector<8x256xi1>, vector<8x256xf32>
    %61 = arith.addf %51, %60 : vector<8x256xf32>
    %c16_i32_16 = arith.constant 16 : i32
    %62 = vector.broadcast %c16_i32_16 : i32 to vector<8x1xi32>
    %63 = arith.muli %21, %62 : vector<8x1xi32>
    %64 = arith.addi %63, %17 : vector<8x1xi32>
    %65 = vector.broadcast %64 : vector<8x1xi32> to vector<8x256xi32>
    %66 = arith.cmpi eq, %42, %65 : vector<8x256xi32>
    %cst_17 = arith.constant 0.000000e+00 : f32
    %67 = vector.shape_cast %40 : vector<8x1xf32> to vector<8x1xf32>
    %68 = vector.broadcast %67 : vector<8x1xf32> to vector<8x256xf32>
    %69 = vector.broadcast %cst_17 : f32 to vector<8x256xf32>
    %70 = arith.select %66, %68, %69 : vector<8x256xi1>, vector<8x256xf32>
    %71 = arith.addf %61, %70 : vector<8x256xf32>
    %c16_i32_18 = arith.constant 16 : i32
    %72 = vector.broadcast %c16_i32_18 : i32 to vector<8x1xi32>
    %73 = arith.muli %11, %72 : vector<8x1xi32>
    %74 = arith.addi %73, %17 : vector<8x1xi32>
    %75 = vector.broadcast %74 : vector<8x1xi32> to vector<8x256xi32>
    %76 = arith.cmpi eq, %42, %75 : vector<8x256xi32>
    %cst_19 = arith.constant 0.000000e+00 : f32
    %77 = vector.shape_cast %41 : vector<8x1xf32> to vector<8x1xf32>
    %78 = vector.broadcast %77 : vector<8x1xf32> to vector<8x256xf32>
    %79 = vector.broadcast %cst_19 : f32 to vector<8x256xf32>
    %80 = arith.select %76, %78, %79 : vector<8x256xi1>, vector<8x256xf32>
    %81 = arith.addf %71, %80 : vector<8x256xf32>
    %cst_20 = arith.constant dense<0.000000e+00> : vector<8x8xf32>
    %82 = tpu.matmul %1, %81, %cst_20 {dimension_numbers = #tpu.dot_dimension_numbers<[1], [1], [0], [0], [0, 0, 1, 0], [], []>} : vector<8x256xf32>, vector<8x256xf32>, vector<8x8xf32> -> vector<8x8xf32>
    %c0_21 = arith.constant 0 : index
    %c0_22 = arith.constant 0 : index
    %83 = vector.load %arg2[%c0_21, %c0_22] : memref<3x16xf32, #tpu.memory_space<vmem>>, vector<3x16xf32>
    %cst_23 = arith.constant dense<0.000000e+00> : vector<8x16xf32>
    %84 = tpu.matmul %0, %83, %cst_23 {dimension_numbers = #tpu.dot_dimension_numbers<[1], [0], [0], [1], [0, 0, 1, 1], [], []>} : vector<8x3xf32>, vector<3x16xf32>, vector<8x16xf32> -> vector<8x16xf32>
    %c0_24 = arith.constant 0 : index
    %c0_25 = arith.constant 0 : index
    %85 = vector.load %arg3[%c0_24, %c0_25] : memref<1x16xf32, #tpu.memory_space<vmem>>, vector<1x16xf32>
    %86 = vector.broadcast %85 : vector<1x16xf32> to vector<8x16xf32>
    %87 = arith.addf %84, %86 : vector<8x16xf32>
    %c0_26 = arith.constant 0 : index
    %c0_27 = arith.constant 0 : index
    %88 = vector.load %arg4[%c0_26, %c0_27] : memref<8x16xf32, #tpu.memory_space<vmem>>, vector<8x16xf32>
    %cst_28 = arith.constant dense<0.000000e+00> : vector<8x16xf32>
    %89 = tpu.matmul %82, %88, %cst_28 {dimension_numbers = #tpu.dot_dimension_numbers<[1], [0], [0], [1], [0, 0, 1, 1], [], []>} : vector<8x8xf32>, vector<8x16xf32>, vector<8x16xf32> -> vector<8x16xf32>
    %c0_29 = arith.constant 0 : index
    %c0_30 = arith.constant 0 : index
    %90 = vector.load %arg5[%c0_29, %c0_30] : memref<1x16xf32, #tpu.memory_space<vmem>>, vector<1x16xf32>
    %91 = vector.broadcast %90 : vector<1x16xf32> to vector<8x16xf32>
    %92 = arith.addf %89, %91 : vector<8x16xf32>
    %93 = arith.addf %87, %92 : vector<8x16xf32>
    %c0_31 = arith.constant 0 : index
    %c0_32 = arith.constant 0 : index
    %94 = vector.load %arg6[%c0_31, %c0_32] : memref<16x16xf32, #tpu.memory_space<vmem>>, vector<16x16xf32>
    %cst_33 = arith.constant dense<0.000000e+00> : vector<8x16xf32>
    %95 = tpu.matmul %93, %94, %cst_33 {dimension_numbers = #tpu.dot_dimension_numbers<[1], [0], [0], [1], [0, 0, 1, 1], [], []>} : vector<8x16xf32>, vector<16x16xf32>, vector<8x16xf32> -> vector<8x16xf32>
    %c0_34 = arith.constant 0 : index
    %c0_35 = arith.constant 0 : index
    %96 = vector.load %arg7[%c0_34, %c0_35] : memref<1x16xf32, #tpu.memory_space<vmem>>, vector<1x16xf32>
    %97 = vector.broadcast %96 : vector<1x16xf32> to vector<8x16xf32>
    %98 = arith.addf %95, %97 : vector<8x16xf32>
    %99 = arith.addf %98, %93 : vector<8x16xf32>
    %c0_36 = arith.constant 0 : index
    %c0_37 = arith.constant 0 : index
    %100 = vector.load %arg8[%c0_36, %c0_37] : memref<16x16xf32, #tpu.memory_space<vmem>>, vector<16x16xf32>
    %cst_38 = arith.constant dense<0.000000e+00> : vector<8x16xf32>
    %101 = tpu.matmul %99, %100, %cst_38 {dimension_numbers = #tpu.dot_dimension_numbers<[1], [0], [0], [1], [0, 0, 1, 1], [], []>} : vector<8x16xf32>, vector<16x16xf32>, vector<8x16xf32> -> vector<8x16xf32>
    %c0_39 = arith.constant 0 : index
    %c0_40 = arith.constant 0 : index
    %102 = vector.load %arg9[%c0_39, %c0_40] : memref<1x16xf32, #tpu.memory_space<vmem>>, vector<1x16xf32>
    %103 = vector.broadcast %102 : vector<1x16xf32> to vector<8x16xf32>
    %104 = arith.addf %101, %103 : vector<8x16xf32>
    %cst_41 = arith.constant 0.000000e+00 : f32
    %105 = vector.broadcast %cst_41 : f32 to vector<8x16xf32>
    %106 = arith.maximumf %104, %105 : vector<8x16xf32>
    %c0_42 = arith.constant 0 : index
    %c0_43 = arith.constant 0 : index
    %107 = vector.load %arg10[%c0_42, %c0_43] : memref<16x4xf32, #tpu.memory_space<vmem>>, vector<16x4xf32>
    %cst_44 = arith.constant dense<0.000000e+00> : vector<8x4xf32>
    %108 = tpu.matmul %106, %107, %cst_44 {dimension_numbers = #tpu.dot_dimension_numbers<[1], [0], [0], [1], [0, 0, 1, 1], [], []>} : vector<8x16xf32>, vector<16x4xf32>, vector<8x4xf32> -> vector<8x4xf32>
    %c0_45 = arith.constant 0 : index
    %c0_46 = arith.constant 0 : index
    %109 = vector.load %arg11[%c0_45, %c0_46] : memref<1x4xf32, #tpu.memory_space<vmem>>, vector<1x4xf32>
    %110 = vector.broadcast %109 : vector<1x4xf32> to vector<8x4xf32>
    %111 = arith.addf %108, %110 : vector<8x4xf32>
    %112 = vector.extract_strided_slice %0 {offsets = [0, 0], sizes = [8, 2], strides = [1, 1]} : vector<8x3xf32> to vector<8x2xf32>
    %113 = vector.extract_strided_slice %111 {offsets = [0, 0], sizes = [8, 2], strides = [1, 1]} : vector<8x4xf32> to vector<8x2xf32>
    %114 = arith.addf %112, %113 : vector<8x2xf32>
    %115 = vector.extract_strided_slice %111 {offsets = [0, 2], sizes = [8, 2], strides = [1, 1]} : vector<8x4xf32> to vector<8x2xf32>
    %116 = arith.addf %112, %115 : vector<8x2xf32>
    %117 = tpu.iota {dimensions = array<i32: 0>} : vector<16x8xi32>
    %118 = tpu.iota {dimensions = array<i32: 1>} : vector<16x8xi32>
    %c2_i32 = arith.constant 2 : i32
    %119 = vector.broadcast %c2_i32 : i32 to vector<16x8xi32>
    %120 = arith.muli %118, %119 : vector<16x8xi32>
    %c0_i32_47 = arith.constant 0 : i32
    %121 = vector.broadcast %c0_i32_47 : i32 to vector<16x8xi32>
    %122 = arith.addi %120, %121 : vector<16x8xi32>
    %123 = arith.cmpi eq, %117, %122 : vector<16x8xi32>
    %cst_48 = arith.constant 1.000000e+00 : f32
    %cst_49 = arith.constant 0.000000e+00 : f32
    %124 = vector.broadcast %cst_48 : f32 to vector<16x8xf32>
    %125 = vector.broadcast %cst_49 : f32 to vector<16x8xf32>
    %126 = arith.select %123, %124, %125 : vector<16x8xi1>, vector<16x8xf32>
    %cst_50 = arith.constant dense<0.000000e+00> : vector<16x2xf32>
    %127 = tpu.matmul %126, %114, %cst_50 {dimension_numbers = #tpu.dot_dimension_numbers<[1], [0], [0], [1], [0, 0, 1, 1], [], []>} : vector<16x8xf32>, vector<8x2xf32>, vector<16x2xf32> -> vector<16x2xf32>
    %c2_i32_51 = arith.constant 2 : i32
    %128 = vector.broadcast %c2_i32_51 : i32 to vector<16x8xi32>
    %129 = arith.muli %118, %128 : vector<16x8xi32>
    %c1_i32_52 = arith.constant 1 : i32
    %130 = vector.broadcast %c1_i32_52 : i32 to vector<16x8xi32>
    %131 = arith.addi %129, %130 : vector<16x8xi32>
    %132 = arith.cmpi eq, %117, %131 : vector<16x8xi32>
    %cst_53 = arith.constant 1.000000e+00 : f32
    %cst_54 = arith.constant 0.000000e+00 : f32
    %133 = vector.broadcast %cst_53 : f32 to vector<16x8xf32>
    %134 = vector.broadcast %cst_54 : f32 to vector<16x8xf32>
    %135 = arith.select %132, %133, %134 : vector<16x8xi1>, vector<16x8xf32>
    %cst_55 = arith.constant dense<0.000000e+00> : vector<16x2xf32>
    %136 = tpu.matmul %135, %116, %cst_55 {dimension_numbers = #tpu.dot_dimension_numbers<[1], [0], [0], [1], [0, 0, 1, 1], [], []>} : vector<16x8xf32>, vector<8x2xf32>, vector<16x2xf32> -> vector<16x2xf32>
    %137 = arith.addf %127, %136 : vector<16x2xf32>
    %138 = vector.extract_strided_slice %137 {offsets = [0, 0], sizes = [16, 1], strides = [1, 1]} : vector<16x2xf32> to vector<16x1xf32>
    %139 = vector.extract_strided_slice %137 {offsets = [0, 1], sizes = [16, 1], strides = [1, 1]} : vector<16x2xf32> to vector<16x1xf32>
    %140 = arith.fptosi %138 : vector<16x1xf32> to vector<16x1xi32>
    %141 = arith.fptosi %139 : vector<16x1xf32> to vector<16x1xi32>
    %c1_i32_56 = arith.constant 1 : i32
    %142 = vector.broadcast %c1_i32_56 : i32 to vector<16x1xi32>
    %143 = arith.addi %140, %142 : vector<16x1xi32>
    %c0_i32_57 = arith.constant 0 : i32
    %c15_i32_58 = arith.constant 15 : i32
    %144 = vector.broadcast %c0_i32_57 : i32 to vector<16x1xi32>
    %145 = arith.maxsi %144, %143 : vector<16x1xi32>
    %146 = vector.broadcast %c15_i32_58 : i32 to vector<16x1xi32>
    %147 = arith.minsi %146, %145 : vector<16x1xi32>
    %c1_i32_59 = arith.constant 1 : i32
    %148 = vector.broadcast %c1_i32_59 : i32 to vector<16x1xi32>
    %149 = arith.addi %141, %148 : vector<16x1xi32>
    %c0_i32_60 = arith.constant 0 : i32
    %c15_i32_61 = arith.constant 15 : i32
    %150 = vector.broadcast %c0_i32_60 : i32 to vector<16x1xi32>
    %151 = arith.maxsi %150, %149 : vector<16x1xi32>
    %152 = vector.broadcast %c15_i32_61 : i32 to vector<16x1xi32>
    %153 = arith.minsi %152, %151 : vector<16x1xi32>
    %c0_i32_62 = arith.constant 0 : i32
    %c15_i32_63 = arith.constant 15 : i32
    %154 = vector.broadcast %c0_i32_62 : i32 to vector<16x1xi32>
    %155 = arith.maxsi %154, %140 : vector<16x1xi32>
    %156 = vector.broadcast %c15_i32_63 : i32 to vector<16x1xi32>
    %157 = arith.minsi %156, %155 : vector<16x1xi32>
    %c0_i32_64 = arith.constant 0 : i32
    %c15_i32_65 = arith.constant 15 : i32
    %158 = vector.broadcast %c0_i32_64 : i32 to vector<16x1xi32>
    %159 = arith.maxsi %158, %141 : vector<16x1xi32>
    %160 = vector.broadcast %c15_i32_65 : i32 to vector<16x1xi32>
    %161 = arith.minsi %160, %159 : vector<16x1xi32>
    %162 = arith.sitofp %157 : vector<16x1xi32> to vector<16x1xf32>
    %163 = arith.subf %138, %162 : vector<16x1xf32>
    %164 = arith.sitofp %161 : vector<16x1xi32> to vector<16x1xf32>
    %165 = arith.subf %139, %164 : vector<16x1xf32>
    %cst_66 = arith.constant 1.000000e+00 : f32
    %166 = vector.broadcast %cst_66 : f32 to vector<16x1xf32>
    %167 = arith.subf %166, %163 : vector<16x1xf32>
    %cst_67 = arith.constant 1.000000e+00 : f32
    %168 = vector.broadcast %cst_67 : f32 to vector<16x1xf32>
    %169 = arith.subf %168, %165 : vector<16x1xf32>
    %170 = arith.mulf %167, %169 : vector<16x1xf32>
    %cst_68 = arith.constant 1.000000e+00 : f32
    %171 = vector.broadcast %cst_68 : f32 to vector<16x1xf32>
    %172 = arith.subf %171, %165 : vector<16x1xf32>
    %173 = arith.mulf %163, %172 : vector<16x1xf32>
    %cst_69 = arith.constant 1.000000e+00 : f32
    %174 = vector.broadcast %cst_69 : f32 to vector<16x1xf32>
    %175 = arith.subf %174, %163 : vector<16x1xf32>
    %176 = arith.mulf %175, %165 : vector<16x1xf32>
    %177 = arith.mulf %163, %165 : vector<16x1xf32>
    %178 = tpu.iota {dimensions = array<i32: 1>} : vector<16x256xi32>
    %c16_i32_70 = arith.constant 16 : i32
    %179 = vector.broadcast %c16_i32_70 : i32 to vector<16x1xi32>
    %180 = arith.muli %157, %179 : vector<16x1xi32>
    %181 = arith.addi %180, %161 : vector<16x1xi32>
    %182 = vector.broadcast %181 : vector<16x1xi32> to vector<16x256xi32>
    %183 = arith.cmpi eq, %178, %182 : vector<16x256xi32>
    %cst_71 = arith.constant 0.000000e+00 : f32
    %184 = vector.shape_cast %170 : vector<16x1xf32> to vector<16x1xf32>
    %185 = vector.broadcast %184 : vector<16x1xf32> to vector<16x256xf32>
    %186 = vector.broadcast %cst_71 : f32 to vector<16x256xf32>
    %187 = arith.select %183, %185, %186 : vector<16x256xi1>, vector<16x256xf32>
    %c16_i32_72 = arith.constant 16 : i32
    %188 = vector.broadcast %c16_i32_72 : i32 to vector<16x1xi32>
    %189 = arith.muli %147, %188 : vector<16x1xi32>
    %190 = arith.addi %189, %161 : vector<16x1xi32>
    %191 = vector.broadcast %190 : vector<16x1xi32> to vector<16x256xi32>
    %192 = arith.cmpi eq, %178, %191 : vector<16x256xi32>
    %cst_73 = arith.constant 0.000000e+00 : f32
    %193 = vector.shape_cast %173 : vector<16x1xf32> to vector<16x1xf32>
    %194 = vector.broadcast %193 : vector<16x1xf32> to vector<16x256xf32>
    %195 = vector.broadcast %cst_73 : f32 to vector<16x256xf32>
    %196 = arith.select %192, %194, %195 : vector<16x256xi1>, vector<16x256xf32>
    %197 = arith.addf %187, %196 : vector<16x256xf32>
    %c16_i32_74 = arith.constant 16 : i32
    %198 = vector.broadcast %c16_i32_74 : i32 to vector<16x1xi32>
    %199 = arith.muli %157, %198 : vector<16x1xi32>
    %200 = arith.addi %199, %153 : vector<16x1xi32>
    %201 = vector.broadcast %200 : vector<16x1xi32> to vector<16x256xi32>
    %202 = arith.cmpi eq, %178, %201 : vector<16x256xi32>
    %cst_75 = arith.constant 0.000000e+00 : f32
    %203 = vector.shape_cast %176 : vector<16x1xf32> to vector<16x1xf32>
    %204 = vector.broadcast %203 : vector<16x1xf32> to vector<16x256xf32>
    %205 = vector.broadcast %cst_75 : f32 to vector<16x256xf32>
    %206 = arith.select %202, %204, %205 : vector<16x256xi1>, vector<16x256xf32>
    %207 = arith.addf %197, %206 : vector<16x256xf32>
    %c16_i32_76 = arith.constant 16 : i32
    %208 = vector.broadcast %c16_i32_76 : i32 to vector<16x1xi32>
    %209 = arith.muli %147, %208 : vector<16x1xi32>
    %210 = arith.addi %209, %153 : vector<16x1xi32>
    %211 = vector.broadcast %210 : vector<16x1xi32> to vector<16x256xi32>
    %212 = arith.cmpi eq, %178, %211 : vector<16x256xi32>
    %cst_77 = arith.constant 0.000000e+00 : f32
    %213 = vector.shape_cast %177 : vector<16x1xf32> to vector<16x1xf32>
    %214 = vector.broadcast %213 : vector<16x1xf32> to vector<16x256xf32>
    %215 = vector.broadcast %cst_77 : f32 to vector<16x256xf32>
    %216 = arith.select %212, %214, %215 : vector<16x256xi1>, vector<16x256xf32>
    %217 = arith.addf %207, %216 : vector<16x256xf32>
    %cst_78 = arith.constant dense<0.000000e+00> : vector<8x16xf32>
    %218 = tpu.matmul %1, %217, %cst_78 {dimension_numbers = #tpu.dot_dimension_numbers<[1], [1], [0], [0], [0, 0, 1, 0], [], []>} : vector<8x256xf32>, vector<16x256xf32>, vector<8x16xf32> -> vector<8x16xf32>
    %219 = vector.extract_strided_slice %218 {offsets = [0, 0], sizes = [8, 8], strides = [1, 1]} : vector<8x16xf32> to vector<8x8xf32>
    %220 = vector.extract_strided_slice %218 {offsets = [0, 8], sizes = [8, 8], strides = [1, 1]} : vector<8x16xf32> to vector<8x8xf32>
    %221 = tpu.iota {dimensions = array<i32: 0>} : vector<16x8xi32>
    %222 = tpu.iota {dimensions = array<i32: 1>} : vector<16x8xi32>
    %c2_i32_79 = arith.constant 2 : i32
    %223 = vector.broadcast %c2_i32_79 : i32 to vector<16x8xi32>
    %224 = arith.muli %222, %223 : vector<16x8xi32>
    %c0_i32_80 = arith.constant 0 : i32
    %225 = vector.broadcast %c0_i32_80 : i32 to vector<16x8xi32>
    %226 = arith.addi %224, %225 : vector<16x8xi32>
    %227 = arith.cmpi eq, %221, %226 : vector<16x8xi32>
    %cst_81 = arith.constant 1.000000e+00 : f32
    %cst_82 = arith.constant 0.000000e+00 : f32
    %228 = vector.broadcast %cst_81 : f32 to vector<16x8xf32>
    %229 = vector.broadcast %cst_82 : f32 to vector<16x8xf32>
    %230 = arith.select %227, %228, %229 : vector<16x8xi1>, vector<16x8xf32>
    %cst_83 = arith.constant dense<0.000000e+00> : vector<16x8xf32>
    %231 = tpu.matmul %230, %219, %cst_83 {dimension_numbers = #tpu.dot_dimension_numbers<[1], [0], [0], [1], [0, 0, 1, 1], [], []>} : vector<16x8xf32>, vector<8x8xf32>, vector<16x8xf32> -> vector<16x8xf32>
    %c2_i32_84 = arith.constant 2 : i32
    %232 = vector.broadcast %c2_i32_84 : i32 to vector<16x8xi32>
    %233 = arith.muli %222, %232 : vector<16x8xi32>
    %c1_i32_85 = arith.constant 1 : i32
    %234 = vector.broadcast %c1_i32_85 : i32 to vector<16x8xi32>
    %235 = arith.addi %233, %234 : vector<16x8xi32>
    %236 = arith.cmpi eq, %221, %235 : vector<16x8xi32>
    %cst_86 = arith.constant 1.000000e+00 : f32
    %cst_87 = arith.constant 0.000000e+00 : f32
    %237 = vector.broadcast %cst_86 : f32 to vector<16x8xf32>
    %238 = vector.broadcast %cst_87 : f32 to vector<16x8xf32>
    %239 = arith.select %236, %237, %238 : vector<16x8xi1>, vector<16x8xf32>
    %cst_88 = arith.constant dense<0.000000e+00> : vector<16x8xf32>
    %240 = tpu.matmul %239, %220, %cst_88 {dimension_numbers = #tpu.dot_dimension_numbers<[1], [0], [0], [1], [0, 0, 1, 1], [], []>} : vector<16x8xf32>, vector<8x8xf32>, vector<16x8xf32> -> vector<16x8xf32>
    %241 = arith.addf %231, %240 : vector<16x8xf32>
    %c0_89 = arith.constant 0 : index
    %c0_90 = arith.constant 0 : index
    %242 = vector.load %arg12[%c0_89, %c0_90] : memref<2x8xf32, #tpu.memory_space<vmem>>, vector<2x8xf32>
    %cst_91 = arith.constant dense<0.000000e+00> : vector<16x8xf32>
    %243 = tpu.matmul %137, %242, %cst_91 {dimension_numbers = #tpu.dot_dimension_numbers<[1], [0], [0], [1], [0, 0, 1, 1], [], []>} : vector<16x2xf32>, vector<2x8xf32>, vector<16x8xf32> -> vector<16x8xf32>
    %c0_92 = arith.constant 0 : index
    %c0_93 = arith.constant 0 : index
    %244 = vector.load %arg13[%c0_92, %c0_93] : memref<1x8xf32, #tpu.memory_space<vmem>>, vector<1x8xf32>
    %245 = vector.broadcast %244 : vector<1x8xf32> to vector<16x8xf32>
    %246 = arith.addf %243, %245 : vector<16x8xf32>
    %c0_94 = arith.constant 0 : index
    %c0_95 = arith.constant 0 : index
    %247 = vector.load %arg14[%c0_94, %c0_95] : memref<3x8xf32, #tpu.memory_space<vmem>>, vector<3x8xf32>
    %cst_96 = arith.constant dense<0.000000e+00> : vector<8x8xf32>
    %248 = tpu.matmul %0, %247, %cst_96 {dimension_numbers = #tpu.dot_dimension_numbers<[1], [0], [0], [1], [0, 0, 1, 1], [], []>} : vector<8x3xf32>, vector<3x8xf32>, vector<8x8xf32> -> vector<8x8xf32>
    %c0_97 = arith.constant 0 : index
    %c0_98 = arith.constant 0 : index
    %249 = vector.load %arg15[%c0_97, %c0_98] : memref<1x8xf32, #tpu.memory_space<vmem>>, vector<1x8xf32>
    %250 = vector.broadcast %249 : vector<1x8xf32> to vector<8x8xf32>
    %251 = arith.addf %248, %250 : vector<8x8xf32>
    %cst_99 = arith.constant 0.000000e+00 : f32
    %252 = vector.broadcast %cst_99 : f32 to vector<8x16xf32>
    %c0_100 = arith.constant 0 : index
    %c0_101 = arith.constant 0 : index
    %253 = vector.load %arg23[%c0_100, %c0_101] : memref<1x16xf32, #tpu.memory_space<vmem>>, vector<1x16xf32>
    %254 = vector.broadcast %253 : vector<1x16xf32> to vector<8x16xf32>
    %255 = arith.addf %252, %254 : vector<8x16xf32>
    %c0_102 = arith.constant 0 : index
    %c0_103 = arith.constant 0 : index
    %c0_104 = arith.constant 0 : index
    %256 = vector.load %arg16[%c0_102, %c0_103, %c0_104] : memref<2x16x8xf32, #tpu.memory_space<vmem>>, vector<1x16x8xf32>
    %257 = vector.shape_cast %256 : vector<1x16x8xf32> to vector<16x8xf32>
    %c0_105 = arith.constant 0 : index
    %c0_106 = arith.constant 0 : index
    %c0_107 = arith.constant 0 : index
    %258 = vector.load %arg18[%c0_105, %c0_106, %c0_107] : memref<2x16x8xf32, #tpu.memory_space<vmem>>, vector<1x16x8xf32>
    %259 = vector.shape_cast %258 : vector<1x16x8xf32> to vector<16x8xf32>
    %c0_108 = arith.constant 0 : index
    %c0_109 = arith.constant 0 : index
    %c0_110 = arith.constant 0 : index
    %260 = vector.load %arg20[%c0_108, %c0_109, %c0_110] : memref<2x16x8xf32, #tpu.memory_space<vmem>>, vector<1x16x8xf32>
    %261 = vector.shape_cast %260 : vector<1x16x8xf32> to vector<16x8xf32>
    %262 = vector.extract_strided_slice %257 {offsets = [0, 0], sizes = [8, 8], strides = [1, 1]} : vector<16x8xf32> to vector<8x8xf32>
    %cst_111 = arith.constant dense<0.000000e+00> : vector<8x8xf32>
    %263 = tpu.matmul %82, %262, %cst_111 {dimension_numbers = #tpu.dot_dimension_numbers<[1], [0], [0], [1], [0, 0, 1, 1], [], []>} : vector<8x8xf32>, vector<8x8xf32>, vector<8x8xf32> -> vector<8x8xf32>
    %264 = vector.extract_strided_slice %257 {offsets = [8, 0], sizes = [8, 8], strides = [1, 1]} : vector<16x8xf32> to vector<8x8xf32>
    %cst_112 = arith.constant dense<0.000000e+00> : vector<8x8xf32>
    %265 = tpu.matmul %251, %264, %cst_112 {dimension_numbers = #tpu.dot_dimension_numbers<[1], [0], [0], [1], [0, 0, 1, 1], [], []>} : vector<8x8xf32>, vector<8x8xf32>, vector<8x8xf32> -> vector<8x8xf32>
    %266 = arith.addf %263, %265 : vector<8x8xf32>
    %c0_113 = arith.constant 0 : index
    %c0_114 = arith.constant 0 : index
    %c0_115 = arith.constant 0 : index
    %267 = vector.load %arg17[%c0_113, %c0_114, %c0_115] : memref<2x1x8xf32, #tpu.memory_space<vmem>>, vector<1x1x8xf32>
    %268 = vector.shape_cast %267 : vector<1x1x8xf32> to vector<1x8xf32>
    %269 = vector.broadcast %268 : vector<1x8xf32> to vector<8x8xf32>
    %270 = arith.addf %266, %269 : vector<8x8xf32>
    %271 = vector.extract_strided_slice %259 {offsets = [0, 0], sizes = [8, 8], strides = [1, 1]} : vector<16x8xf32> to vector<8x8xf32>
    %cst_116 = arith.constant dense<0.000000e+00> : vector<16x8xf32>
    %272 = tpu.matmul %241, %271, %cst_116 {dimension_numbers = #tpu.dot_dimension_numbers<[1], [0], [0], [1], [0, 0, 1, 1], [], []>} : vector<16x8xf32>, vector<8x8xf32>, vector<16x8xf32> -> vector<16x8xf32>
    %273 = vector.extract_strided_slice %259 {offsets = [8, 0], sizes = [8, 8], strides = [1, 1]} : vector<16x8xf32> to vector<8x8xf32>
    %cst_117 = arith.constant dense<0.000000e+00> : vector<16x8xf32>
    %274 = tpu.matmul %246, %273, %cst_117 {dimension_numbers = #tpu.dot_dimension_numbers<[1], [0], [0], [1], [0, 0, 1, 1], [], []>} : vector<16x8xf32>, vector<8x8xf32>, vector<16x8xf32> -> vector<16x8xf32>
    %275 = arith.addf %272, %274 : vector<16x8xf32>
    %c0_118 = arith.constant 0 : index
    %c0_119 = arith.constant 0 : index
    %c0_120 = arith.constant 0 : index
    %276 = vector.load %arg19[%c0_118, %c0_119, %c0_120] : memref<2x1x8xf32, #tpu.memory_space<vmem>>, vector<1x1x8xf32>
    %277 = vector.shape_cast %276 : vector<1x1x8xf32> to vector<1x8xf32>
    %278 = vector.broadcast %277 : vector<1x8xf32> to vector<16x8xf32>
    %279 = arith.addf %275, %278 : vector<16x8xf32>
    %280 = vector.extract_strided_slice %261 {offsets = [0, 0], sizes = [8, 8], strides = [1, 1]} : vector<16x8xf32> to vector<8x8xf32>
    %cst_121 = arith.constant dense<0.000000e+00> : vector<16x8xf32>
    %281 = tpu.matmul %241, %280, %cst_121 {dimension_numbers = #tpu.dot_dimension_numbers<[1], [0], [0], [1], [0, 0, 1, 1], [], []>} : vector<16x8xf32>, vector<8x8xf32>, vector<16x8xf32> -> vector<16x8xf32>
    %282 = vector.extract_strided_slice %261 {offsets = [8, 0], sizes = [8, 8], strides = [1, 1]} : vector<16x8xf32> to vector<8x8xf32>
    %cst_122 = arith.constant dense<0.000000e+00> : vector<16x8xf32>
    %283 = tpu.matmul %246, %282, %cst_122 {dimension_numbers = #tpu.dot_dimension_numbers<[1], [0], [0], [1], [0, 0, 1, 1], [], []>} : vector<16x8xf32>, vector<8x8xf32>, vector<16x8xf32> -> vector<16x8xf32>
    %284 = arith.addf %281, %283 : vector<16x8xf32>
    %c0_123 = arith.constant 0 : index
    %c0_124 = arith.constant 0 : index
    %c0_125 = arith.constant 0 : index
    %285 = vector.load %arg21[%c0_123, %c0_124, %c0_125] : memref<2x1x8xf32, #tpu.memory_space<vmem>>, vector<1x1x8xf32>
    %286 = vector.shape_cast %285 : vector<1x1x8xf32> to vector<1x8xf32>
    %287 = vector.broadcast %286 : vector<1x8xf32> to vector<16x8xf32>
    %288 = arith.addf %284, %287 : vector<16x8xf32>
    %cst_126 = arith.constant dense<0.000000e+00> : vector<8x16xf32>
    %289 = tpu.matmul %270, %279, %cst_126 {dimension_numbers = #tpu.dot_dimension_numbers<[1], [1], [0], [0], [0, 0, 1, 0], [], []>} : vector<8x8xf32>, vector<16x8xf32>, vector<8x16xf32> -> vector<8x16xf32>
    %cst_127 = arith.constant 0.353553385 : f32
    %290 = vector.broadcast %cst_127 : f32 to vector<8x16xf32>
    %291 = arith.mulf %289, %290 : vector<8x16xf32>
    %cst_128 = arith.constant dense<0xFF800000> : vector<8xf32>
    %292 = vector.multi_reduction <maximumf>, %291, %cst_128 [1] : vector<8x16xf32> to vector<8xf32>
    %293 = vector.shape_cast %292 : vector<8xf32> to vector<8x1xf32>
    %294 = vector.broadcast %293 : vector<8x1xf32> to vector<8x16xf32>
    %295 = arith.subf %291, %294 : vector<8x16xf32>
    %296 = math.exp %295 : vector<8x16xf32>
    %cst_129 = arith.constant dense<0.000000e+00> : vector<8xf32>
    %297 = vector.multi_reduction <add>, %296, %cst_129 [1] : vector<8x16xf32> to vector<8xf32>
    %298 = vector.shape_cast %297 : vector<8xf32> to vector<8x1xf32>
    %299 = tpu.reciprocal %298 {approx = true} : vector<8x1xf32> -> vector<8x1xf32>
    %300 = vector.broadcast %299 : vector<8x1xf32> to vector<8x16xf32>
    %301 = arith.mulf %296, %300 : vector<8x16xf32>
    %cst_130 = arith.constant dense<0.000000e+00> : vector<8x8xf32>
    %302 = tpu.matmul %301, %288, %cst_130 {dimension_numbers = #tpu.dot_dimension_numbers<[1], [0], [0], [1], [0, 0, 1, 1], [], []>} : vector<8x16xf32>, vector<16x8xf32>, vector<8x8xf32> -> vector<8x8xf32>
    %c0_131 = arith.constant 0 : index
    %c0_132 = arith.constant 0 : index
    %c0_133 = arith.constant 0 : index
    %303 = vector.load %arg22[%c0_131, %c0_132, %c0_133] : memref<2x8x16xf32, #tpu.memory_space<vmem>>, vector<1x8x16xf32>
    %304 = vector.shape_cast %303 : vector<1x8x16xf32> to vector<8x16xf32>
    %cst_134 = arith.constant dense<0.000000e+00> : vector<8x16xf32>
    %305 = tpu.matmul %302, %304, %cst_134 {dimension_numbers = #tpu.dot_dimension_numbers<[1], [0], [0], [1], [0, 0, 1, 1], [], []>} : vector<8x8xf32>, vector<8x16xf32>, vector<8x16xf32> -> vector<8x16xf32>
    %306 = arith.addf %255, %305 : vector<8x16xf32>
    %c1 = arith.constant 1 : index
    %c0_135 = arith.constant 0 : index
    %c0_136 = arith.constant 0 : index
    %307 = vector.load %arg16[%c1, %c0_135, %c0_136] : memref<2x16x8xf32, #tpu.memory_space<vmem>>, vector<1x16x8xf32>
    %308 = vector.shape_cast %307 : vector<1x16x8xf32> to vector<16x8xf32>
    %c1_137 = arith.constant 1 : index
    %c0_138 = arith.constant 0 : index
    %c0_139 = arith.constant 0 : index
    %309 = vector.load %arg18[%c1_137, %c0_138, %c0_139] : memref<2x16x8xf32, #tpu.memory_space<vmem>>, vector<1x16x8xf32>
    %310 = vector.shape_cast %309 : vector<1x16x8xf32> to vector<16x8xf32>
    %c1_140 = arith.constant 1 : index
    %c0_141 = arith.constant 0 : index
    %c0_142 = arith.constant 0 : index
    %311 = vector.load %arg20[%c1_140, %c0_141, %c0_142] : memref<2x16x8xf32, #tpu.memory_space<vmem>>, vector<1x16x8xf32>
    %312 = vector.shape_cast %311 : vector<1x16x8xf32> to vector<16x8xf32>
    %313 = vector.extract_strided_slice %308 {offsets = [0, 0], sizes = [8, 8], strides = [1, 1]} : vector<16x8xf32> to vector<8x8xf32>
    %cst_143 = arith.constant dense<0.000000e+00> : vector<8x8xf32>
    %314 = tpu.matmul %82, %313, %cst_143 {dimension_numbers = #tpu.dot_dimension_numbers<[1], [0], [0], [1], [0, 0, 1, 1], [], []>} : vector<8x8xf32>, vector<8x8xf32>, vector<8x8xf32> -> vector<8x8xf32>
    %315 = vector.extract_strided_slice %308 {offsets = [8, 0], sizes = [8, 8], strides = [1, 1]} : vector<16x8xf32> to vector<8x8xf32>
    %cst_144 = arith.constant dense<0.000000e+00> : vector<8x8xf32>
    %316 = tpu.matmul %251, %315, %cst_144 {dimension_numbers = #tpu.dot_dimension_numbers<[1], [0], [0], [1], [0, 0, 1, 1], [], []>} : vector<8x8xf32>, vector<8x8xf32>, vector<8x8xf32> -> vector<8x8xf32>
    %317 = arith.addf %314, %316 : vector<8x8xf32>
    %c1_145 = arith.constant 1 : index
    %c0_146 = arith.constant 0 : index
    %c0_147 = arith.constant 0 : index
    %318 = vector.load %arg17[%c1_145, %c0_146, %c0_147] : memref<2x1x8xf32, #tpu.memory_space<vmem>>, vector<1x1x8xf32>
    %319 = vector.shape_cast %318 : vector<1x1x8xf32> to vector<1x8xf32>
    %320 = vector.broadcast %319 : vector<1x8xf32> to vector<8x8xf32>
    %321 = arith.addf %317, %320 : vector<8x8xf32>
    %322 = vector.extract_strided_slice %310 {offsets = [0, 0], sizes = [8, 8], strides = [1, 1]} : vector<16x8xf32> to vector<8x8xf32>
    %cst_148 = arith.constant dense<0.000000e+00> : vector<16x8xf32>
    %323 = tpu.matmul %241, %322, %cst_148 {dimension_numbers = #tpu.dot_dimension_numbers<[1], [0], [0], [1], [0, 0, 1, 1], [], []>} : vector<16x8xf32>, vector<8x8xf32>, vector<16x8xf32> -> vector<16x8xf32>
    %324 = vector.extract_strided_slice %310 {offsets = [8, 0], sizes = [8, 8], strides = [1, 1]} : vector<16x8xf32> to vector<8x8xf32>
    %cst_149 = arith.constant dense<0.000000e+00> : vector<16x8xf32>
    %325 = tpu.matmul %246, %324, %cst_149 {dimension_numbers = #tpu.dot_dimension_numbers<[1], [0], [0], [1], [0, 0, 1, 1], [], []>} : vector<16x8xf32>, vector<8x8xf32>, vector<16x8xf32> -> vector<16x8xf32>
    %326 = arith.addf %323, %325 : vector<16x8xf32>
    %c1_150 = arith.constant 1 : index
    %c0_151 = arith.constant 0 : index
    %c0_152 = arith.constant 0 : index
    %327 = vector.load %arg19[%c1_150, %c0_151, %c0_152] : memref<2x1x8xf32, #tpu.memory_space<vmem>>, vector<1x1x8xf32>
    %328 = vector.shape_cast %327 : vector<1x1x8xf32> to vector<1x8xf32>
    %329 = vector.broadcast %328 : vector<1x8xf32> to vector<16x8xf32>
    %330 = arith.addf %326, %329 : vector<16x8xf32>
    %331 = vector.extract_strided_slice %312 {offsets = [0, 0], sizes = [8, 8], strides = [1, 1]} : vector<16x8xf32> to vector<8x8xf32>
    %cst_153 = arith.constant dense<0.000000e+00> : vector<16x8xf32>
    %332 = tpu.matmul %241, %331, %cst_153 {dimension_numbers = #tpu.dot_dimension_numbers<[1], [0], [0], [1], [0, 0, 1, 1], [], []>} : vector<16x8xf32>, vector<8x8xf32>, vector<16x8xf32> -> vector<16x8xf32>
    %333 = vector.extract_strided_slice %312 {offsets = [8, 0], sizes = [8, 8], strides = [1, 1]} : vector<16x8xf32> to vector<8x8xf32>
    %cst_154 = arith.constant dense<0.000000e+00> : vector<16x8xf32>
    %334 = tpu.matmul %246, %333, %cst_154 {dimension_numbers = #tpu.dot_dimension_numbers<[1], [0], [0], [1], [0, 0, 1, 1], [], []>} : vector<16x8xf32>, vector<8x8xf32>, vector<16x8xf32> -> vector<16x8xf32>
    %335 = arith.addf %332, %334 : vector<16x8xf32>
    %c1_155 = arith.constant 1 : index
    %c0_156 = arith.constant 0 : index
    %c0_157 = arith.constant 0 : index
    %336 = vector.load %arg21[%c1_155, %c0_156, %c0_157] : memref<2x1x8xf32, #tpu.memory_space<vmem>>, vector<1x1x8xf32>
    %337 = vector.shape_cast %336 : vector<1x1x8xf32> to vector<1x8xf32>
    %338 = vector.broadcast %337 : vector<1x8xf32> to vector<16x8xf32>
    %339 = arith.addf %335, %338 : vector<16x8xf32>
    %cst_158 = arith.constant dense<0.000000e+00> : vector<8x16xf32>
    %340 = tpu.matmul %321, %330, %cst_158 {dimension_numbers = #tpu.dot_dimension_numbers<[1], [1], [0], [0], [0, 0, 1, 0], [], []>} : vector<8x8xf32>, vector<16x8xf32>, vector<8x16xf32> -> vector<8x16xf32>
    %cst_159 = arith.constant 0.353553385 : f32
    %341 = vector.broadcast %cst_159 : f32 to vector<8x16xf32>
    %342 = arith.mulf %340, %341 : vector<8x16xf32>
    %cst_160 = arith.constant dense<0xFF800000> : vector<8xf32>
    %343 = vector.multi_reduction <maximumf>, %342, %cst_160 [1] : vector<8x16xf32> to vector<8xf32>
    %344 = vector.shape_cast %343 : vector<8xf32> to vector<8x1xf32>
    %345 = vector.broadcast %344 : vector<8x1xf32> to vector<8x16xf32>
    %346 = arith.subf %342, %345 : vector<8x16xf32>
    %347 = math.exp %346 : vector<8x16xf32>
    %cst_161 = arith.constant dense<0.000000e+00> : vector<8xf32>
    %348 = vector.multi_reduction <add>, %347, %cst_161 [1] : vector<8x16xf32> to vector<8xf32>
    %349 = vector.shape_cast %348 : vector<8xf32> to vector<8x1xf32>
    %350 = tpu.reciprocal %349 {approx = true} : vector<8x1xf32> -> vector<8x1xf32>
    %351 = vector.broadcast %350 : vector<8x1xf32> to vector<8x16xf32>
    %352 = arith.mulf %347, %351 : vector<8x16xf32>
    %cst_162 = arith.constant dense<0.000000e+00> : vector<8x8xf32>
    %353 = tpu.matmul %352, %339, %cst_162 {dimension_numbers = #tpu.dot_dimension_numbers<[1], [0], [0], [1], [0, 0, 1, 1], [], []>} : vector<8x16xf32>, vector<16x8xf32>, vector<8x8xf32> -> vector<8x8xf32>
    %c1_163 = arith.constant 1 : index
    %c0_164 = arith.constant 0 : index
    %c0_165 = arith.constant 0 : index
    %354 = vector.load %arg22[%c1_163, %c0_164, %c0_165] : memref<2x8x16xf32, #tpu.memory_space<vmem>>, vector<1x8x16xf32>
    %355 = vector.shape_cast %354 : vector<1x8x16xf32> to vector<8x16xf32>
    %cst_166 = arith.constant dense<0.000000e+00> : vector<8x16xf32>
    %356 = tpu.matmul %353, %355, %cst_166 {dimension_numbers = #tpu.dot_dimension_numbers<[1], [0], [0], [1], [0, 0, 1, 1], [], []>} : vector<8x8xf32>, vector<8x16xf32>, vector<8x16xf32> -> vector<8x16xf32>
    %357 = arith.addf %306, %356 : vector<8x16xf32>
    %c0_167 = arith.constant 0 : index
    %c0_168 = arith.constant 0 : index
    %358 = vector.load %arg24[%c0_167, %c0_168] : memref<24x32xf32, #tpu.memory_space<vmem>>, vector<8x32xf32>
    %cst_169 = arith.constant dense<0.000000e+00> : vector<8x32xf32>
    %359 = tpu.matmul %82, %358, %cst_169 {dimension_numbers = #tpu.dot_dimension_numbers<[1], [0], [0], [1], [0, 0, 1, 1], [], []>} : vector<8x8xf32>, vector<8x32xf32>, vector<8x32xf32> -> vector<8x32xf32>
    %c8 = arith.constant 8 : index
    %c0_170 = arith.constant 0 : index
    %360 = vector.load %arg24[%c8, %c0_170] : memref<24x32xf32, #tpu.memory_space<vmem>>, vector<16x32xf32>
    %cst_171 = arith.constant dense<0.000000e+00> : vector<8x32xf32>
    %361 = tpu.matmul %357, %360, %cst_171 {dimension_numbers = #tpu.dot_dimension_numbers<[1], [0], [0], [1], [0, 0, 1, 1], [], []>} : vector<8x16xf32>, vector<16x32xf32>, vector<8x32xf32> -> vector<8x32xf32>
    %362 = arith.addf %359, %361 : vector<8x32xf32>
    %c0_172 = arith.constant 0 : index
    %c0_173 = arith.constant 0 : index
    %363 = vector.load %arg25[%c0_172, %c0_173] : memref<1x32xf32, #tpu.memory_space<vmem>>, vector<1x32xf32>
    %364 = vector.broadcast %363 : vector<1x32xf32> to vector<8x32xf32>
    %365 = arith.addf %362, %364 : vector<8x32xf32>
    %c0_174 = arith.constant 0 : index
    %c0_175 = arith.constant 0 : index
    %366 = vector.load %arg26[%c0_174, %c0_175] : memref<3x32xf32, #tpu.memory_space<vmem>>, vector<3x32xf32>
    %cst_176 = arith.constant dense<0.000000e+00> : vector<8x32xf32>
    %367 = tpu.matmul %0, %366, %cst_176 {dimension_numbers = #tpu.dot_dimension_numbers<[1], [0], [0], [1], [0, 0, 1, 1], [], []>} : vector<8x3xf32>, vector<3x32xf32>, vector<8x32xf32> -> vector<8x32xf32>
    %c0_177 = arith.constant 0 : index
    %c0_178 = arith.constant 0 : index
    %368 = vector.load %arg27[%c0_177, %c0_178] : memref<1x32xf32, #tpu.memory_space<vmem>>, vector<1x32xf32>
    %369 = vector.broadcast %368 : vector<1x32xf32> to vector<8x32xf32>
    %370 = arith.addf %367, %369 : vector<8x32xf32>
    %371 = arith.addf %365, %370 : vector<8x32xf32>
    %c0_179 = arith.constant 0 : index
    %c0_180 = arith.constant 0 : index
    %372 = vector.load %arg28[%c0_179, %c0_180] : memref<32x32xf32, #tpu.memory_space<vmem>>, vector<32x32xf32>
    %cst_181 = arith.constant dense<0.000000e+00> : vector<8x32xf32>
    %373 = tpu.matmul %371, %372, %cst_181 {dimension_numbers = #tpu.dot_dimension_numbers<[1], [0], [0], [1], [0, 0, 1, 1], [], []>} : vector<8x32xf32>, vector<32x32xf32>, vector<8x32xf32> -> vector<8x32xf32>
    %c0_182 = arith.constant 0 : index
    %c0_183 = arith.constant 0 : index
    %374 = vector.load %arg29[%c0_182, %c0_183] : memref<1x32xf32, #tpu.memory_space<vmem>>, vector<1x32xf32>
    %375 = vector.broadcast %374 : vector<1x32xf32> to vector<8x32xf32>
    %376 = arith.addf %373, %375 : vector<8x32xf32>
    %377 = arith.addf %376, %371 : vector<8x32xf32>
    %c0_184 = arith.constant 0 : index
    %c0_185 = arith.constant 0 : index
    %378 = vector.load %arg30[%c0_184, %c0_185] : memref<32x32xf32, #tpu.memory_space<vmem>>, vector<32x32xf32>
    %cst_186 = arith.constant dense<0.000000e+00> : vector<8x32xf32>
    %379 = tpu.matmul %377, %378, %cst_186 {dimension_numbers = #tpu.dot_dimension_numbers<[1], [0], [0], [1], [0, 0, 1, 1], [], []>} : vector<8x32xf32>, vector<32x32xf32>, vector<8x32xf32> -> vector<8x32xf32>
    %c0_187 = arith.constant 0 : index
    %c0_188 = arith.constant 0 : index
    %380 = vector.load %arg31[%c0_187, %c0_188] : memref<1x32xf32, #tpu.memory_space<vmem>>, vector<1x32xf32>
    %381 = vector.broadcast %380 : vector<1x32xf32> to vector<8x32xf32>
    %382 = arith.addf %379, %381 : vector<8x32xf32>
    %c0_189 = arith.constant 0 : index
    %c0_190 = arith.constant 0 : index
    %383 = vector.load %arg28[%c0_189, %c0_190] : memref<32x32xf32, #tpu.memory_space<vmem>>, vector<32x32xf32>
    %cst_191 = arith.constant dense<0.000000e+00> : vector<8x32xf32>
    %384 = tpu.matmul %382, %383, %cst_191 {dimension_numbers = #tpu.dot_dimension_numbers<[1], [0], [0], [1], [0, 0, 1, 1], [], []>} : vector<8x32xf32>, vector<32x32xf32>, vector<8x32xf32> -> vector<8x32xf32>
    %c0_192 = arith.constant 0 : index
    %c0_193 = arith.constant 0 : index
    %385 = vector.load %arg29[%c0_192, %c0_193] : memref<1x32xf32, #tpu.memory_space<vmem>>, vector<1x32xf32>
    %386 = vector.broadcast %385 : vector<1x32xf32> to vector<8x32xf32>
    %387 = arith.addf %384, %386 : vector<8x32xf32>
    %388 = arith.addf %387, %382 : vector<8x32xf32>
    %c0_194 = arith.constant 0 : index
    %c0_195 = arith.constant 0 : index
    %389 = vector.load %arg30[%c0_194, %c0_195] : memref<32x32xf32, #tpu.memory_space<vmem>>, vector<32x32xf32>
    %cst_196 = arith.constant dense<0.000000e+00> : vector<8x32xf32>
    %390 = tpu.matmul %388, %389, %cst_196 {dimension_numbers = #tpu.dot_dimension_numbers<[1], [0], [0], [1], [0, 0, 1, 1], [], []>} : vector<8x32xf32>, vector<32x32xf32>, vector<8x32xf32> -> vector<8x32xf32>
    %c0_197 = arith.constant 0 : index
    %c0_198 = arith.constant 0 : index
    %391 = vector.load %arg31[%c0_197, %c0_198] : memref<1x32xf32, #tpu.memory_space<vmem>>, vector<1x32xf32>
    %392 = vector.broadcast %391 : vector<1x32xf32> to vector<8x32xf32>
    %393 = arith.addf %390, %392 : vector<8x32xf32>
    %c0_199 = arith.constant 0 : index
    %c0_200 = arith.constant 0 : index
    %394 = vector.load %arg28[%c0_199, %c0_200] : memref<32x32xf32, #tpu.memory_space<vmem>>, vector<32x32xf32>
    %cst_201 = arith.constant dense<0.000000e+00> : vector<8x32xf32>
    %395 = tpu.matmul %393, %394, %cst_201 {dimension_numbers = #tpu.dot_dimension_numbers<[1], [0], [0], [1], [0, 0, 1, 1], [], []>} : vector<8x32xf32>, vector<32x32xf32>, vector<8x32xf32> -> vector<8x32xf32>
    %c0_202 = arith.constant 0 : index
    %c0_203 = arith.constant 0 : index
    %396 = vector.load %arg29[%c0_202, %c0_203] : memref<1x32xf32, #tpu.memory_space<vmem>>, vector<1x32xf32>
    %397 = vector.broadcast %396 : vector<1x32xf32> to vector<8x32xf32>
    %398 = arith.addf %395, %397 : vector<8x32xf32>
    %399 = arith.addf %398, %393 : vector<8x32xf32>
    %c0_204 = arith.constant 0 : index
    %c0_205 = arith.constant 0 : index
    %400 = vector.load %arg30[%c0_204, %c0_205] : memref<32x32xf32, #tpu.memory_space<vmem>>, vector<32x32xf32>
    %cst_206 = arith.constant dense<0.000000e+00> : vector<8x32xf32>
    %401 = tpu.matmul %399, %400, %cst_206 {dimension_numbers = #tpu.dot_dimension_numbers<[1], [0], [0], [1], [0, 0, 1, 1], [], []>} : vector<8x32xf32>, vector<32x32xf32>, vector<8x32xf32> -> vector<8x32xf32>
    %c0_207 = arith.constant 0 : index
    %c0_208 = arith.constant 0 : index
    %402 = vector.load %arg31[%c0_207, %c0_208] : memref<1x32xf32, #tpu.memory_space<vmem>>, vector<1x32xf32>
    %403 = vector.broadcast %402 : vector<1x32xf32> to vector<8x32xf32>
    %404 = arith.addf %401, %403 : vector<8x32xf32>
    %cst_209 = arith.constant 0.000000e+00 : f32
    %405 = vector.broadcast %cst_209 : f32 to vector<8x32xf32>
    %406 = arith.maximumf %404, %405 : vector<8x32xf32>
    %c0_210 = arith.constant 0 : index
    %c0_211 = arith.constant 0 : index
    %407 = vector.load %arg32[%c0_210, %c0_211] : memref<32x128xf32, #tpu.memory_space<vmem>>, vector<32x128xf32>
    %cst_212 = arith.constant dense<0.000000e+00> : vector<8x128xf32>
    %408 = tpu.matmul %406, %407, %cst_212 {dimension_numbers = #tpu.dot_dimension_numbers<[1], [0], [0], [1], [0, 0, 1, 1], [], []>} : vector<8x32xf32>, vector<32x128xf32>, vector<8x128xf32> -> vector<8x128xf32>
    %c0_213 = arith.constant 0 : index
    %c0_214 = arith.constant 0 : index
    %409 = vector.load %arg33[%c0_213, %c0_214] : memref<1x128xf32, #tpu.memory_space<vmem>>, vector<1x128xf32>
    %410 = vector.broadcast %409 : vector<1x128xf32> to vector<8x128xf32>
    %411 = arith.addf %408, %410 : vector<8x128xf32>
    %c0_215 = arith.constant 0 : index
    %c0_216 = arith.constant 0 : index
    %412 = vector.load %arg34[%c0_215, %c0_216] : memref<8x128xf32, #tpu.memory_space<vmem>>, vector<8x128xf32>
    tpu.vector_store %arg34[%c0_215, %c0_216], %411 {strides = array<i32>} : memref<8x128xf32, #tpu.memory_space<vmem>>, vector<8x128xf32>,
    return
  }
}

</mosaic_0001>

<bundles_post_ra>
// kernel: decoder_forward.1
= control target key start
LH: loop header
LB: loop body
LE: loop exit
PB: predicated region body
PF: predicated region fallthrough
CT: control target
= control target key end

     0   :  { %s1821_s6 = smov 127   ;;  %v1822_v13 = vmov 0   ;;  %v170_v30 = vlaneseq  ;;  %s1823_s7 = smov 1   ;;  %vm286_vm13 = vcmask 1042432   ;;  %vm282_vm14 = vcmask 23552   ;;  %s2243_s0 = inlined_call_operand.smem [shape: u32[35], index: -1, kind: input, shape index: {}] }
   0x1   :  { %s1868_s5 = sld [smem:[%s2243_s0]]   ;;  %1790 = vset.pattern.permute.xlu2 %v1822_v13  ;;  %1792 = vset.pattern.permute.xlu1 %v1822_v13  ;;  %s1824_s11 = smov 3   ;;  %vm315_vm15 = vcmask 64512  }
   0x2   :  { %1791 = vset.pattern.permute.xlu0 %v1822_v13  ;;  %v1882_v31 = vand.u32 127, %v170_v30  ;;  %s1632_s10 = sld [smem:[%s2243_s0 + %s1823_s7]]   ;;  %s1825_s15 = smov 2  }
   0x3   :  { %s1634_s14 = sld [smem:[%s2243_s0 + %s1824_s11]]   ;;  %s1826_s19 = smov 4  }
   0x4   :  { %v1885_v33 = vadd.s32 128, %v1882_v31  ;;  %s1633_s18 = sld [smem:[%s2243_s0 + %s1825_s15]]   ;;  %s1827_s23 = smov 5  }
   0x5   :  { %s1635_s22 = sld [smem:[%s2243_s0 + %s1826_s19]]   ;;  %s1828_s27 = smov 7  }
   0x6   :  { %s1636_s26 = sld [smem:[%s2243_s0 + %s1827_s23]]   ;;  %s1829_s1 = smov 6  }
   0x7   :  { %v1871_v0 = vld [vmem:[%s1868_s5] sm:$0xff]  ;;  %s1638_s30 = sld [smem:[%s2243_s0 + %s1828_s27]]   ;;  %s1830_s7 = smov 9  }
   0x8   :  { %vm1736_vm0 = vcmp.lt.s32.totalorder %v1871_v0, 0  ;;  %v1737_v1 = vceil.f32 %v1871_v0  ;;  %v1738_v2 = vfloor.f32 %v1871_v0  ;;  %v1898_v53 = vld [vmem:[%s1632_s10] sm:$0xff]  ;;  %v1900_v54 = vld [vmem:[%s1632_s10 + $0x8] sm:$0xff]  ;;  %s1637_s4 = sld [smem:[%s2243_s0 + %s1829_s1]]   ;;  %s1831_s11 = smov 8  }
   0x9   :  { %v1793_v62 = vld [vmem:[%s1634_s14] ss:$0 sm:$0xff]  ;;  %s1640_s10 = sld [smem:[%s2243_s0 + %s1830_s7]]   ;;  %s1832_s14 = smov 11  }
   0xa   :  { %v1739_v3 = vsel %vm1736_vm0, %v1737_v1, %v1738_v2  ;;  %v277_v55 = vld [vmem:[%s1633_s18] sm:$0x7]  ;;  %vm346_vm0 = vcmask 130048   ;;  %s1639_s15 = sld [smem:[%s2243_s0 + %s1831_s11]]   ;;  %s1833_s19 = smov 10  }
   0xb   :  { %v1740_v4 = vcvt.f32.s32 %v1739_v3  ;;  %v310_v56 = vld [vmem:[%s1635_s22] sm:$0xff]  ;;  %1666 = vmatpush.msk.msra.mxu2 %vm286_vm13, %v277_v55  ;;  %s1642_s18 = sld [smem:[%s2243_s0 + %s1832_s14]]   ;;  %s1834_s23 = smov 126  }
   0xc   :  { %334 = vmatpush.msra.mxu3 %v310_v56  ;;  %1667 = vmatmul.msk.f32.vlgmr.msra.gmra.mxu2 %vm282_vm14, %v1871_v0  ;;  %v1794_v1 = vld [vmem:[%s1636_s26] ss:$0 sm:$0xff]  ;;  %s1641_s22 = sld [smem:[%s2243_s0 + %s1833_s19]]   ;;  %s1836_s24 = smov 14  }
   0xd   :  { %vm151_vm1 = vcmp.gt.s32.totalorder %v1740_v4, 0  ;;  %v146_v5 = vadd.s32 1, %v1740_v4  ;;  %s1645_s27 = sld [smem:[%s2243_s0 + %s1836_s24]]   ;;  %s1837_s28 = smov 12  }
   0xe   :  { %v152_v6 = vsel %vm151_vm1, %v1740_v4, 0  ;;  %v341_v60 = vld [vmem:[%s1637_s4 + $0x8] sm:$0xff]  ;;  %v340_v61 = vld [vmem:[%s1637_s4] sm:$0xff]  ;;  %s1643_s1 = sld [smem:[%s2243_s0 + %s1837_s28]]   ;;  %s1838_s2 = smov 15  }
   0xf   :  { %vm153_vm2 = vcmp.lt.s32.totalorder %v152_v6, 15  ;;  %vm147_vm3 = vcmp.gt.s32.totalorder %v146_v5, 0  ;;  %364 = vmatpush.msrb.mxu2 %v341_v60  ;;  %s1976_s7 = sld [smem:[%s2243_s0 + %s1838_s2]]   ;;  %s1839_s8 = smov 13  }
  0x10   :  { %v154_v7 = vsel %vm153_vm2, %v152_v6, 15  ;;  %v148_v8 = vsel %vm147_vm3, %v146_v5, 0  ;;  %v372_v6 = vld [vmem:[%s1639_s15 + $0x8] sm:$0xff]  ;;  %s1981_s11 = sld [smem:[%s2243_s0 + %s1839_s8]]   ;;  %s1840_s12 = smov 16  }
  0x11   :  { %174 = vrot.lane.b32.xlu0 %v154_v7, %s1821_s6  ;;  %v155_v9 = vcvt.s32.f32 %v154_v7  ;;  %vm149_vm4 = vcmp.lt.s32.totalorder %v148_v8, 15  ;;  %v173_v14 = vmul.u32 16, %v154_v7  ;;  %365 = vmatpush.msrb.mxu2 %v340_v61  ;;  %v371_v7 = vld [vmem:[%s1639_s15] sm:$0xff]  ;;  %s2019_s14 = sld [smem:[%s2243_s0 + %s1840_s12]]   ;;  %s1841_s16 = smov 20  }
  0x12   :  { %v150_v10 = vsel %vm149_vm4, %v148_v8, 15  ;;  %394 = vmatpush.msrb.mxu3 %v372_v6  ;;  %v1795_v8 = vld [vmem:[%s1638_s30] ss:$0 sm:$0xff]  ;;  %s2028_s19 = sld [smem:[%s2243_s0 + %s1841_s16]]   ;;  %s1844_s24 = smov 17  }
  0x13   :  { %v156_v11 = vsub.f32 %v1871_v0, %v155_v9  ;;  %205 = vrot.lane.b32.xlu1 %v150_v10, %s1821_s6  ;;  %v189_v18 = vmul.u32 16, %v150_v10  ;;  %v401_v13 = vld [vmem:[%s1641_s22] sm:$0xff]  ;;  %s1845_s28 = smov 19   ;;  %s1846_s2 = smov 21  }
  0x14   :  { %395 = vmatpush.msrb.mxu3 %v371_v7  ;;  %s1847_s8 = smov 22   ;;  %s1848_s12 = smov 23  }
  0x15   :  { %v157_v12 = vsub.f32 1.0, %v156_v11  ;;  %v1798_v6 = vld [vmem:[%s1976_s7] ss:$0 sm:$0xff]  ;;  %s2111_s7 = sld [smem:[%s2243_s0 + %s1846_s2]]   ;;  %s1849_s16 = smov 24  }
  0x16   :  { %s1854_s4 = smov 28   ;;  %s1856_s15 = smov 31  }
  0x17   :  { %s1659_s9 = sld [smem:[%s2243_s0 + %s1854_s4]]   ;;  %s1858_s21 = smov 33  }
  0x18   :  { %s1662_s17 = sld [smem:[%s2243_s0 + %s1856_s15]]   ;;  %s1859_s25 = smov 34  }
  0x19   :  { %159 = vrot.lane.b32.xlu0 %v157_v12, %s1821_s6 }
  0x1b   :  { %165 = vrot.lane.b32.xlu1 %v156_v11, %s1821_s6 }
  0x83   :  { %v175_v15 = vpop.permute.xlu0 %174 }
  0x84   :  { %v176_v16 = vadd.s32 %v175_v15, %v173_v14  ;;  %v190_v22 = vadd.s32 %v189_v18, %v175_v15 }
  0x85   :  { %v206_v17 = vpop.permute.xlu1 %205 }
  0x86   :  { %178 = vperm.xlu2 %1790, %v176_v16   ;;  %v207_v26 = vadd.s32 %v206_v17, %v173_v14  ;;  %v222_v27 = vadd.s32 %v206_v17, %v189_v18  ;;  %v1796_v14 = vld [vmem:[%s1640_s10] ss:$0 sm:$0xff]  ;;  %v437_v18 = vshrl.u32 %v170_v30, 7  ;;  %s1855_s10 = smov 30  }
  0x87   :  { %s2216_s13 = sld [smem:[%s2243_s0 + %s1855_s10]]  }
  0x8b   :  { %v160_v19 = vpop.permute.xlu0 %159 }
  0x8c   :  { %v162_v20 = vmul.f32 %v160_v19, %v157_v12  ;;  %v163_v21 = vmul.f32 %v160_v19, %v156_v11  ;;  %v439_v19 = vmul.u32 2, %v1882_v31 }
  0x8d   :  { %v166_v23 = vpop.permute.xlu1 %165 }
  0x8e   :  { %184 = vperm.xlu0 %1791, %v162_v20   ;;  %198 = vperm.xlu1 %1792, %v163_v21   ;;  %v168_v24 = vmul.f32 %v166_v23, %v157_v12  ;;  %v169_v25 = vmul.f32 %v166_v23, %v156_v11  ;;  %v402_v12 = vld [vmem:[%s1641_s22 + $0x8] sm:$0xff]  ;;  %v1797_v20 = vld [vmem:[%s1642_s18] ss:$0 sm:$0xff]  ;;  %vm440_vm1 = vcmp.eq.s32.totalorder %v437_v18, %v439_v19  ;;  %s1857_s18 = smov 32  }
  0x8f   :  { %192 = vperm.xlu2 %1790, %v190_v22   ;;  %v307_v63 = vpop.f32.mrf.mxu2  ;;  %s1663_s20 = sld [smem:[%s2243_s0 + %s1857_s18]]  }
  0x90   :  { %v308_v2 = vadd.f32 %v1793_v62, %v307_v63 }
  0x96   :  { %230 = vperm.xlu0 %1791, %v169_v25   ;;  %215 = vperm.xlu1 %1792, %v168_v24   ;;  %v1835_v24 = vmov 0.0  }
  0x97   :  { %209 = vperm.xlu2 %1790, %v207_v26   ;;  %v1947_v25 = vsel %vm440_vm1, 1.0, %v1835_v24  ;;  %v438_v26 = vadd.s32 8, %v437_v18 }
  0x99   :  { %vm441_vm2 = vcmp.eq.s32.totalorder %v438_v26, %v439_v19 }
  0x9f   :  { %224 = vperm.xlu2 %1790, %v222_v27   ;;  %v1954_v27 = vsel %vm441_vm2, 1.0, %v1835_v24 }
  0xe0   :  { %v179_v28 = vpop.permute.xlu2 %178 }
  0xe1   :  { %vm180_vm5 = vcmp.eq.s32.totalorder %v1882_v31, %v179_v28  ;;  %vm181_vm6 = vcmp.eq.s32.totalorder %v1885_v33, %v179_v28  ;;  %v814_v28 = vld [vmem:[%s1645_s27] sm:$0x7]  ;;  %s2093_s27 = sld [smem:[%s2243_s0 + %s1844_s24]]  }
  0xe2   :  { %s1664_s24 = sld [smem:[%s2243_s0 + %s1858_s21]]  }
  0xe9   :  { %v193_v29 = vpop.permute.xlu2 %192 }
  0xea   :  { %vm194_vm7 = vcmp.eq.s32.totalorder %v1882_v31, %v193_v29  ;;  %vm195_vm8 = vcmp.eq.s32.totalorder %v1885_v33, %v193_v29  ;;  %v444_v29 = vadd.s32 1, %v439_v19 }
  0xec   :  { %vm445_vm3 = vcmp.eq.s32.totalorder %v437_v18, %v444_v29  ;;  %vm446_vm4 = vcmp.eq.s32.totalorder %v438_v26, %v444_v29 }
  0xf1   :  { %v210_v32 = vpop.permute.xlu2 %209 }
  0xf2   :  { %vm211_vm9 = vcmp.eq.s32.totalorder %v1882_v31, %v210_v32  ;;  %vm212_vm10 = vcmp.eq.s32.totalorder %v1885_v33, %v210_v32 }
  0xf9   :  { %v225_v40 = vpop.permute.xlu2 %224 }
  0xfa   :  { %vm226_vm11 = vcmp.eq.s32.totalorder %v1882_v31, %v225_v40  ;;  %vm227_vm12 = vcmp.eq.s32.totalorder %v1885_v33, %v225_v40 }
 0x100   :  { %v185_v34 = vpop.permute.xlu0 %184  ;;  %v199_v35 = vpop.permute.xlu1 %198 }
 0x101   :  { %v187_v36 = vsel %vm180_vm5, %v185_v34, 0.0  ;;  %v188_v37 = vsel %vm181_vm6, %v185_v34, 0.0  ;;  %v201_v38 = vsel %vm194_vm7, %v199_v35, 0.0  ;;  %v202_v39 = vsel %vm195_vm8, %v199_v35, 0.0 }
 0x102   :  { %v203_v41 = vadd.f32 %v201_v38, %v187_v36  ;;  %v204_v42 = vadd.f32 %v202_v39, %v188_v37  ;;  %v1962_v34 = vsel %vm445_vm3, 1.0, %v1835_v24  ;;  %v1966_v35 = vsel %vm446_vm4, 1.0, %v1835_v24  ;;  %v775_v36 = vld [vmem:[%s1643_s1] sm:$0x3]  ;;  %s2101_s1 = sld [smem:[%s2243_s0 + %s1845_s28]]  }
 0x103   :  { %vm787_vm5 = vcmask 1041408   ;;  %vm780_vm6 = vcmask 15360   ;;  %s1665_s28 = sld [smem:[%s2243_s0 + %s1859_s25]]  }
 0x108   :  { %v231_v43 = vpop.permute.xlu0 %230  ;;  %v216_v44 = vpop.permute.xlu1 %215 }
 0x109   :  { %v218_v45 = vsel %vm211_vm9, %v216_v44, 0.0  ;;  %v219_v46 = vsel %vm212_vm10, %v216_v44, 0.0  ;;  %v233_v49 = vsel %vm226_vm11, %v231_v43, 0.0  ;;  %v234_v50 = vsel %vm227_vm12, %v231_v43, 0.0 }
 0x10a   :  { %v220_v47 = vadd.f32 %v218_v45, %v203_v41  ;;  %v221_v48 = vadd.f32 %v219_v46, %v204_v42 }
 0x10c   :  { %v235_v51 = vadd.f32 %v233_v49, %v220_v47  ;;  %v236_v52 = vadd.f32 %v234_v50, %v221_v48 }
 0x10e   :  { %252 = vmatpush.xpose.msra.mxu0 %v235_v51  ;;  %272 = vmatpush.xpose.msra.mxu1 %v236_v52 }
 0x111   :  { %253 = vmatmul.f32.vlgmr.msra.gmra.mxu0 %v1898_v53  ;;  %273 = vmatmul.f32.vlgmr.msra.gmra.mxu1 %v1900_v54 }
 0x112   :  { %424 = vmatpush.msrb.mxu0 %v402_v12 }
 0x114   :  { %425 = vmatpush.msrb.mxu0 %v401_v13 }
 0x18e   :  { %v254_v57 = vpop.f32.mrf.mxu0  ;;  %v274_v58 = vpop.f32.mrf.mxu1 }
 0x18f   :  { %v1919_v59 = vadd.f32 %v274_v58, %v254_v57 }
 0x191   :  { %1668 = vmatmul.msk.f32.vlgmr.msra.gmra.mxu3 %vm315_vm15, %v1919_v59 }
 0x214   :  { %v336_v3 = vpop.f32.mrf.mxu3 }
 0x215   :  { %v337_v4 = vadd.f32 %v1794_v1, %v336_v3 }
 0x217   :  { %v339_v5 = vadd.f32 %v337_v4, %v308_v2 }
 0x219   :  { %1669 = vmatmul.msk.f32.vlgmr.msrb.gmra.mxu2 %vm346_vm0, %v339_v5 }
 0x29c   :  { %v367_v9 = vpop.f32.mrf.mxu2 }
 0x29d   :  { %v368_v10 = vadd.f32 %v1795_v8, %v367_v9  ;;  %v848_v8 = vld [vmem:[%s2019_s14 + $0x8] sm:$0xff] }
 0x29f   :  { %v370_v11 = vadd.f32 %v368_v10, %v339_v5  ;;  %v852_v10 = vld [vmem:[%s2028_s19 + $0x8] sm:$0xff] }
 0x2a1   :  { %1670 = vmatmul.msk.f32.vlgmr.msrb.gmra.mxu3 %vm346_vm0, %v370_v11 }
 0x324   :  { %v397_v15 = vpop.f32.mrf.mxu3 }
 0x325   :  { %v398_v16 = vadd.f32 %v1796_v14, %v397_v15  ;;  %v1799_v15 = vld [vmem:[%s1981_s11] ss:$0 sm:$0xff]  ;;  %s2149_s11 = sld [smem:[%s2243_s0 + %s1847_s8]]  }
 0x327   :  { %v400_v17 = vmax.f32 %v398_v16, 0.0 }
 0x329   :  { %1671 = vmatmul.msk.f32.vlgmr.msrb.gmra.mxu0 %vm346_vm0, %v400_v17 }
 0x3a6   :  { %v427_v21 = vpop.f32.mrf.mxu0 }
 0x3a7   :  { %v428_v22 = vadd.f32 %v1797_v20, %v427_v21 }
 0x3a9   :  { %v430_v23 = vadd.f32 %v428_v22, %v1871_v0  ;;  %432 = vrot.lane.b32.xlu1 %v428_v22, %s1834_s23  ;;  %s1843_s23 = smov 120  }
 0x3ab   :  { %499 = vmatpush.msra.mxu2 %v430_v23 }
 0x3ac   :  { %1674 = vmatmul.msk.f32.vlgmr.msra.gmra.mxu2 %vm315_vm15, %v1947_v25 }
 0x3ad   :  { %1683 = vmatpush.msk.msrb.mxu2 %vm286_vm13, %v814_v28 }
 0x3af   :  { %871 = vmatpush.msra.mxu2 %v848_v8 }
 0x3b4   :  { %1675 = vmatmul.msk.f32.gmra.mxu2 %vm315_vm15, %v1954_v27 }
 0x3bc   :  { %1684 = vmatmul.msk.f32.vlgmr.msrb.gmra.mxu2 %vm282_vm14, %v1871_v0 }
 0x3bd   :  { %980 = vmatpush.msrb.mxu2 %v852_v10 }
 0x41b   :  { %v433_v30 = vpop.permute.xlu1 %432 }
 0x41c   :  { %v435_v32 = vadd.f32 %v433_v30, %v1871_v0 }
 0x41e   :  { %470 = vmatpush.msrb.mxu1 %v435_v32 }
 0x41f   :  { %1672 = vmatmul.msk.f32.vlgmr.msrb.gmra.mxu1 %vm315_vm15, %v1962_v34 }
 0x420   :  { %1680 = vmatpush.msk.msra.mxu1 %vm787_vm5, %v775_v36 }
 0x427   :  { %1673 = vmatmul.msk.f32.gmra.mxu1 %vm315_vm15, %v1966_v35 }
 0x42f   :  { %v501_v0 = vpop.f32.mrf.mxu2 }
 0x437   :  { %v504_v42 = vpop.f32.mrf.mxu2 }
 0x43f   :  { %v839_v7 = vpop.f32.mrf.mxu2 }
 0x440   :  { %v2023_v9 = vadd.f32 %v1798_v6, %v839_v7 }
 0x442   :  { %1685 = vmatmul.msk.f32.vlgmr.msra.gmra.mxu2 %vm315_vm15, %v2023_v9 }
 0x49c   :  { %v472_v37 = vpop.f32.mrf.mxu1 }
 0x49d   :  { %v502_v38 = vadd.f32 %v501_v0, %v472_v37 }
 0x49f   :  { %1681 = vmatmul.msk.f32.vlgmr.msra.gmra.mxu1 %vm780_vm6, %v502_v38  ;;  %vm1741_vm7 = vcmp.lt.s32.totalorder %v502_v38, 0  ;;  %v1742_v39 = vceil.f32 %v502_v38  ;;  %v1743_v40 = vfloor.f32 %v502_v38 }
 0x4a1   :  { %v1744_v41 = vsel %vm1741_vm7, %v1742_v39, %v1743_v40 }
 0x4a2   :  { %v1745_v43 = vcvt.f32.s32 %v1744_v41 }
 0x4a4   :  { %v475_v44 = vpop.f32.mrf.mxu1  ;;  %vm519_vm8 = vcmp.gt.s32.totalorder %v1745_v43, 0  ;;  %v509_v1 = vadd.s32 1, %v1745_v43 }
 0x4a5   :  { %v505_v45 = vadd.f32 %v504_v42, %v475_v44  ;;  %v520_v46 = vsel %vm519_vm8, %v1745_v43, 0 }
 0x4a6   :  { %vm523_vm9 = vcmp.lt.s32.totalorder %v520_v46, 15  ;;  %vm511_vm3 = vcmp.gt.s32.totalorder %v509_v1, 0 }
 0x4a7   :  { %v1983_v47 = vsel %vm523_vm9, %v520_v46, 15  ;;  %1682 = vmatmul.msk.f32.gmra.mxu1 %vm780_vm6, %v505_v45  ;;  %vm1746_vm10 = vcmp.lt.s32.totalorder %v505_v45, 0  ;;  %v1747_v48 = vceil.f32 %v505_v45  ;;  %v1748_v49 = vfloor.f32 %v505_v45 }
 0x4a8   :  { %559 = vrot.lane.b32.xlu0 %v1983_v47, %s1821_s6  ;;  %v527_v50 = vcvt.s32.f32 %v1983_v47  ;;  %v512_v4 = vsel %vm511_vm3, %v509_v1, 0  ;;  %v557_v14 = vmul.u32 16, %v1983_v47 }
 0x4a9   :  { %v1749_v51 = vsel %vm1746_vm10, %v1747_v48, %v1748_v49  ;;  %vm515_vm4 = vcmp.lt.s32.totalorder %v512_v4, 15 }
 0x4aa   :  { %v1988_v52 = vsub.f32 %v502_v38, %v527_v50  ;;  %v1750_v55 = vcvt.f32.s32 %v1749_v51  ;;  %v2012_v5 = vsel %vm515_vm4, %v512_v4, 15 }
 0x4ab   :  { %v589_v13 = vmul.u32 16, %v2012_v5 }
 0x4ac   :  { %v1991_v56 = vsub.f32 1.0, %v1988_v52  ;;  %vm521_vm11 = vcmp.gt.s32.totalorder %v1750_v55, 0  ;;  %v510_v57 = vadd.s32 1, %v1750_v55 }
 0x4ad   :  { %v522_v58 = vsel %vm521_vm11, %v1750_v55, 0 }
 0x4ae   :  { %535 = vrot.lane.b32.xlu1 %v1991_v56, %s1821_s6  ;;  %vm525_vm12 = vcmp.lt.s32.totalorder %v522_v58, 15  ;;  %vm513_vm1 = vcmp.gt.s32.totalorder %v510_v57, 0 }
 0x4af   :  { %v1995_v60 = vsel %vm525_vm12, %v522_v58, 15  ;;  %v514_v61 = vsel %vm513_vm1, %v510_v57, 0 }
 0x4b0   :  { %561 = vrot.lane.b32.xlu2 %v1995_v60, %s1821_s6  ;;  %v528_v62 = vcvt.s32.f32 %v1995_v60  ;;  %vm517_vm2 = vcmp.lt.s32.totalorder %v514_v61, 15  ;;  %v558_v38 = vmul.u32 16, %v1995_v60 }
 0x4b1   :  { %v518_v3 = vsel %vm517_vm2, %v514_v61, 15 }
 0x4b2   :  { %v2000_v63 = vsub.f32 %v505_v45, %v528_v62  ;;  %v590_v29 = vmul.u32 16, %v518_v3 }
 0x4b4   :  { %v2003_v2 = vsub.f32 1.0, %v2000_v63 }
 0x4b6   :  { %537 = vrot.lane.b32.xlu0 %v2003_v2, %s1821_s6  ;;  %623 = vrot.lane.b32.xlu1 %v518_v3, %s1821_s6 }
 0x4b8   :  { %549 = vrot.lane.b32.xlu2 %v2000_v63, %s1821_s6 }
 0x4be   :  { %547 = vrot.lane.b32.xlu0 %v1988_v52, %s1821_s6 }
 0x4c0   :  { %621 = vrot.lane.b32.xlu2 %v2012_v5, %s1821_s6  ;;  %s1842_s6 = smov 18  }
 0x4c1   :  { %s2074_s22 = sld [smem:[%s2243_s0 + %s1842_s6]]   ;;  %s1850_s6 = smov 26  }
 0x50a   :  { %v562_v11 = vpop.permute.xlu2 %561 }
 0x50b   :  { %v592_v36 = vadd.s32 %v590_v29, %v562_v11  ;;  %v564_v40 = vadd.s32 %v562_v11, %v558_v38 }
 0x512   :  { %v550_v12 = vpop.permute.xlu2 %549 }
 0x513   :  { %v554_v39 = vmul.f32 %v550_v12, %v2003_v2  ;;  %v556_v43 = vmul.f32 %v550_v12, %v2000_v63 }
 0x51a   :  { %v560_v16 = vpop.permute.xlu0 %559  ;;  %v622_v21 = vpop.permute.xlu2 %621 }
 0x51b   :  { %v563_v17 = vadd.s32 %v560_v16, %v557_v14  ;;  %v591_v18 = vadd.s32 %v589_v13, %v560_v16  ;;  %v625_v23 = vadd.s32 %v622_v21, %v557_v14  ;;  %v655_v48 = vadd.s32 %v622_v21, %v589_v13 }
 0x51c   :  { %v808_v19 = vpop.f32.mrf.mxu1 }
 0x51d   :  { %v2036_v20 = vadd.f32 %v1799_v15, %v808_v19  ;;  %566 = vperm.xlu1 %1792, %v563_v17   ;;  %594 = vperm.xlu2 %1790, %v591_v18  }
 0x51f   :  { %1691 = vmatmul.msk.f32.vlgmr.msrb.gmra.mxu2 %vm315_vm15, %v2036_v20 }
 0x520   :  { %v536_v22 = vpop.permute.xlu1 %535 }
 0x521   :  { %v543_v24 = vmul.f32 %v536_v22, %v1988_v52  ;;  %v541_v0 = vmul.f32 %v536_v22, %v1991_v56 }
 0x524   :  { %v811_v26 = vpop.f32.mrf.mxu1 }
 0x525   :  { %628 = vperm.xlu1 %1792, %v625_v23   ;;  %605 = vperm.xlu2 %1790, %v543_v24   ;;  %v2041_v28 = vadd.f32 %v1799_v15, %v811_v26 }
 0x527   :  { %1692 = vmatmul.msk.f32.gmra.mxu2 %vm315_vm15, %v2041_v28 }
 0x528   :  { %v624_v30 = vpop.permute.xlu1 %623  ;;  %v538_v37 = vpop.permute.xlu0 %537 }
 0x529   :  { %v656_v32 = vadd.s32 %v624_v30, %v590_v29  ;;  %v626_v41 = vadd.s32 %v624_v30, %v558_v38  ;;  %v544_v44 = vmul.f32 %v538_v37, %v2000_v63  ;;  %v542_v46 = vmul.f32 %v538_v37, %v2003_v2 }
 0x52b   :  { %661 = vperm.xlu0 %1791, %v656_v32  }
 0x52d   :  { %577 = vperm.xlu1 %1792, %v541_v0   ;;  %597 = vperm.xlu2 %1790, %v592_v36  }
 0x530   :  { %v548_v42 = vpop.permute.xlu0 %547 }
 0x531   :  { %v553_v45 = vmul.f32 %v548_v42, %v1991_v56  ;;  %v555_v47 = vmul.f32 %v548_v42, %v1988_v52  ;;  %v850_v42 = vld [vmem:[%s2074_s22 + $0x8] sm:$0xff] }
 0x533   :  { %644 = vperm.xlu0 %1791, %v554_v39  }
 0x535   :  { %569 = vperm.xlu1 %1792, %v564_v40   ;;  %631 = vperm.xlu2 %1790, %v626_v41  }
 0x53b   :  { %674 = vperm.xlu0 %1791, %v556_v43  }
 0x53d   :  { %610 = vperm.xlu1 %1792, %v544_v44   ;;  %639 = vperm.xlu2 %1790, %v553_v45   ;;  %v1705_v45 = vld [vmem:[%s2028_s19 + $0x18] sm:$0xff] }
 0x543   :  { %582 = vperm.xlu0 %1791, %v542_v46  }
 0x545   :  { %669 = vperm.xlu1 %1792, %v555_v47  }
 0x54b   :  { %658 = vperm.xlu0 %1791, %v655_v48  }
 0x577   :  { %v595_v50 = vpop.permute.xlu2 %594 }
 0x578   :  { %vm599_vm5 = vcmp.eq.s32.totalorder %v1882_v31, %v595_v50  ;;  %vm600_vm6 = vcmp.eq.s32.totalorder %v1885_v33, %v595_v50 }
 0x57f   :  { %v606_v55 = vpop.permute.xlu2 %605 }
 0x580   :  { %v613_v52 = vsel %vm599_vm5, %v606_v55, 0.0  ;;  %v614_v1 = vsel %vm600_vm6, %v606_v55, 0.0 }
 0x587   :  { %v598_v61 = vpop.permute.xlu2 %597 }
 0x588   :  { %vm601_vm7 = vcmp.eq.s32.totalorder %v1882_v31, %v598_v61  ;;  %vm602_vm8 = vcmp.eq.s32.totalorder %v1885_v33, %v598_v61 }
 0x58f   :  { %v567_v49 = vpop.permute.xlu1 %566  ;;  %v632_v63 = vpop.permute.xlu2 %631 }
 0x590   :  { %vm571_vm9 = vcmp.eq.s32.totalorder %v1882_v31, %v567_v49  ;;  %vm572_vm10 = vcmp.eq.s32.totalorder %v1885_v33, %v567_v49  ;;  %vm635_vm11 = vcmp.eq.s32.totalorder %v1882_v31, %v632_v63  ;;  %vm636_vm12 = vcmp.eq.s32.totalorder %v1885_v33, %v632_v63  ;;  %v873_v49 = vpop.f32.mrf.mxu2 }
 0x597   :  { %v629_v51 = vpop.permute.xlu1 %628  ;;  %v640_v17 = vpop.permute.xlu2 %639 }
 0x598   :  { %vm633_vm3 = vcmp.eq.s32.totalorder %v1882_v31, %v629_v51  ;;  %vm634_vm4 = vcmp.eq.s32.totalorder %v1885_v33, %v629_v51 }
 0x599   :  { %v647_v26 = vsel %vm633_vm3, %v640_v17, 0.0  ;;  %v648_v29 = vsel %vm634_vm4, %v640_v17, 0.0 }
 0x59d   :  { %v662_v57 = vpop.permute.xlu0 %661 }
 0x59e   :  { %vm665_vm5 = vcmp.eq.s32.totalorder %v1882_v31, %v662_v57  ;;  %vm666_vm6 = vcmp.eq.s32.totalorder %v1885_v33, %v662_v57 }
 0x59f   :  { %v578_v58 = vpop.permute.xlu1 %577 }
 0x5a0   :  { %v585_v8 = vsel %vm571_vm9, %v578_v58, 0.0  ;;  %v586_v10 = vsel %vm572_vm10, %v578_v58, 0.0 }
 0x5a1   :  { %v617_v18 = vadd.f32 %v613_v52, %v585_v8  ;;  %v618_v19 = vadd.f32 %v614_v1, %v586_v10  ;;  %v1700_v8 = vld [vmem:[%s2019_s14 + $0x10] sm:$0xff] }
 0x5a2   :  { %v982_v57 = vpop.f32.mrf.mxu2 }
 0x5a3   :  { %v651_v32 = vadd.f32 %v647_v26, %v617_v18  ;;  %v652_v36 = vadd.f32 %v648_v29, %v618_v19 }
 0x5a5   :  { %v645_v60 = vpop.permute.xlu0 %644 }
 0x5a6   :  { %v649_v13 = vsel %vm635_vm11, %v645_v60, 0.0  ;;  %v650_v14 = vsel %vm636_vm12, %v645_v60, 0.0 }
 0x5a7   :  { %v570_v56 = vpop.permute.xlu1 %569 }
 0x5a8   :  { %vm573_vm1 = vcmp.eq.s32.totalorder %v1882_v31, %v570_v56  ;;  %vm574_vm2 = vcmp.eq.s32.totalorder %v1885_v33, %v570_v56  ;;  %v1801_v56 = vld [vmem:[%s2101_s1] ss:$0 sm:$0xff] }
 0x5aa   :  { %v985_v52 = vpop.f32.mrf.mxu2 }
 0x5ad   :  { %v675_v62 = vpop.permute.xlu0 %674 }
 0x5ae   :  { %v679_v21 = vsel %vm665_vm5, %v675_v62, 0.0  ;;  %v680_v22 = vsel %vm666_vm6, %v675_v62, 0.0 }
 0x5af   :  { %v611_v2 = vpop.permute.xlu1 %610 }
 0x5b0   :  { %v615_v4 = vsel %vm601_vm7, %v611_v2, 0.0  ;;  %v616_v5 = vsel %vm602_vm8, %v611_v2, 0.0  ;;  %v1800_v2 = vld [vmem:[%s2093_s27] ss:$0 sm:$0xff] }
 0x5b5   :  { %v583_v3 = vpop.permute.xlu0 %582 }
 0x5b6   :  { %v587_v6 = vsel %vm573_vm1, %v583_v3, 0.0  ;;  %v588_v7 = vsel %vm574_vm2, %v583_v3, 0.0 }
 0x5b7   :  { %v619_v11 = vadd.f32 %v615_v4, %v587_v6  ;;  %v620_v12 = vadd.f32 %v616_v5, %v588_v7  ;;  %v670_v0 = vpop.permute.xlu1 %669  ;;  %v1802_v6 = vld [vmem:[%s2111_s7] ss:$0 sm:$0xff] }
 0x5b9   :  { %v653_v15 = vadd.f32 %v649_v13, %v619_v11  ;;  %v654_v16 = vadd.f32 %v650_v14, %v620_v12  ;;  %v1704_v12 = vld [vmem:[%s2028_s19 + $0x10] sm:$0xff] }
 0x5bb   :  { %v683_v23 = vadd.f32 %v679_v21, %v653_v15  ;;  %v684_v24 = vadd.f32 %v680_v22, %v654_v16 }
 0x5bd   :  { %v659_v30 = vpop.permute.xlu0 %658  ;;  %699 = vmatpush.xpose.msra.mxu3 %v683_v23  ;;  %719 = vmatpush.xpose.msra.mxu0 %v684_v24  ;;  %v1703_v23 = vld [vmem:[%s2074_s22 + $0x18] sm:$0xff]  ;;  %v1081_v24 = vld [vmem:[%s2149_s11] sm:$0xff] }
 0x5be   :  { %vm663_vm7 = vcmp.eq.s32.totalorder %v1882_v31, %v659_v30  ;;  %vm664_vm8 = vcmp.eq.s32.totalorder %v1885_v33, %v659_v30  ;;  %1100 = vmatpush.msra.mxu2 %v1081_v24 }
 0x5bf   :  { %v677_v37 = vsel %vm663_vm7, %v670_v0, 0.0  ;;  %v678_v38 = vsel %vm664_vm8, %v670_v0, 0.0 }
 0x5c0   :  { %v681_v39 = vadd.f32 %v677_v37, %v651_v32  ;;  %v682_v40 = vadd.f32 %v678_v38, %v652_v36  ;;  %v1702_v32 = vld [vmem:[%s2074_s22 + $0x10] sm:$0xff] }
 0x5c1   :  { %1199 = vmatpush.msrb.mxu2 %v1702_v32  ;;  %v1470_v32 = vld [vmem:[%s2216_s13] sm:$0xff] }
 0x5c2   :  { %700 = vmatpush.xpose.msra.mxu3 %v681_v39  ;;  %720 = vmatpush.xpose.msra.mxu0 %v682_v40 }
 0x5c5   :  { %701 = vmatmul.f32.vlgmr.msra.gmra.mxu3 %v1898_v53  ;;  %721 = vmatmul.f32.vlgmr.msra.gmra.mxu0 %v1900_v54  ;;  %v847_v54 = vld [vmem:[%s2019_s14] sm:$0xff] }
 0x642   :  { %v722_v31 = vpop.f32.mrf.mxu0 }
 0x648   :  { %v702_v33 = vpop.f32.mrf.mxu3 }
 0x649   :  { %v723_v41 = vadd.f32 %v722_v31, %v702_v33 }
 0x64b   :  { %726 = vrot.lane.b32.xlu2 %v723_v41, %s1843_s23  ;;  %767 = vmatpush.msrb.mxu0 %v723_v41  ;;  %s1851_s23 = smov 25  }
 0x64c   :  { %1678 = vmatmul.msk.f32.vlgmr.msrb.gmra.mxu0 %vm315_vm15, %v1947_v25  ;;  %v849_v25 = vld [vmem:[%s2074_s22] sm:$0xff]  ;;  %s1657_s22 = sld [smem:[%s2243_s0 + %s1850_s6]]  }
 0x64d   :  { %922 = vmatpush.msra.mxu0 %v850_v42  ;;  %951 = vmatpush.msrb.mxu1 %v849_v25  ;;  %s2197_s26 = sld [smem:[%s2243_s0 + %s1851_s23]]  }
 0x654   :  { %1679 = vmatmul.msk.f32.gmra.mxu0 %vm315_vm15, %v1954_v27  ;;  %v851_v27 = vld [vmem:[%s2028_s19] sm:$0xff]  ;;  %s2172_s19 = sld [smem:[%s2243_s0 + %s1849_s16]]  }
 0x65c   :  { %1687 = vmatmul.msk.f32.vlgmr.msra.gmra.mxu0 %vm315_vm15, %v2036_v20 }
 0x664   :  { %1688 = vmatmul.msk.f32.gmra.mxu0 %vm315_vm15, %v2041_v28 }
 0x6a5   :  { %v727_v53 = vpop.permute.xlu2 %726 }
 0x6a6   :  { %744 = vmatpush.msrb.mxu3 %v727_v53 }
 0x6a7   :  { %1676 = vmatmul.msk.f32.vlgmr.msrb.gmra.mxu3 %vm315_vm15, %v1962_v34  ;;  %v1701_v34 = vld [vmem:[%s2019_s14 + $0x18] sm:$0xff]  ;;  %s2158_s14 = sld [smem:[%s2243_s0 + %s1848_s12]]  }
 0x6a8   :  { %891 = vmatpush.msra.mxu3 %v847_v54 }
 0x6aa   :  { %1003 = vmatpush.msrb.mxu3 %v851_v27 }
 0x6af   :  { %1677 = vmatmul.msk.f32.gmra.mxu3 %vm315_vm15, %v1966_v35 }
 0x6b7   :  { %1686 = vmatmul.msk.f32.vlgmr.msra.gmra.mxu3 %vm315_vm15, %v1919_v59 }
 0x6b8   :  { %1130 = vmatpush.msra.mxu3 %v1701_v34 }
 0x6c9   :  { %v769_v35 = vpop.f32.mrf.mxu0 }
 0x6d1   :  { %v772_v46 = vpop.f32.mrf.mxu0 }
 0x6d9   :  { %v924_v50 = vpop.f32.mrf.mxu0 }
 0x6e1   :  { %v927_v60 = vpop.f32.mrf.mxu0 }
 0x72a   :  { %v746_v43 = vpop.f32.mrf.mxu3 }
 0x72b   :  { %v2105_v44 = vadd.f32 %v769_v35, %v746_v43  ;;  %v1806_v35 = vld [vmem:[%s2101_s1 + $0x1] ss:$0 sm:$0xff] }
 0x72d   :  { %1689 = vmatmul.msk.f32.vlgmr.msrb.gmra.mxu1 %vm315_vm15, %v2105_v44  ;;  %1693 = vmatmul.msk.f32.vlgmr.msrb.gmra.mxu3 %vm315_vm15, %v2105_v44 }
 0x72e   :  { %1229 = vmatpush.msrb.mxu3 %v1705_v45 }
 0x732   :  { %v749_v47 = vpop.f32.mrf.mxu3 }
 0x733   :  { %v2117_v48 = vadd.f32 %v772_v46, %v749_v47  ;;  %v1803_v47 = vld [vmem:[%s2093_s27 + $0x1] ss:$0 sm:$0xff]  ;;  %s1852_s27 = smov 27  }
 0x734   :  { %s1658_s30 = sld [smem:[%s2243_s0 + %s1852_s27]]  }
 0x735   :  { %1690 = vmatmul.msk.f32.gmra.mxu1 %vm315_vm15, %v2117_v48  ;;  %1694 = vmatmul.msk.f32.gmra.mxu3 %vm315_vm15, %v2117_v48 }
 0x73a   :  { %v893_v51 = vpop.f32.mrf.mxu3 }
 0x73b   :  { %v894_v1 = vadd.f32 %v893_v51, %v873_v49  ;;  %v1357_v49 = vld [vmem:[%s2172_s19] sm:$0xff] }
 0x73d   :  { %1706 = vmatmul.msk.f32.vlgmr.msra.gmra.mxu3 %vm315_vm15, %v2023_v9  ;;  %v900_v11 = vadd.f32 %v1800_v2, %v894_v1  ;;  %v1359_v1 = vld [vmem:[%s2172_s19 + $0x10] sm:$0xff]  ;;  %v1408_v2 = vld [vmem:[%s1657_s22] sm:$0x7] }
 0x745   :  { %1714 = vmatmul.msk.f32.vlgmr.msrb.gmra.mxu3 %vm315_vm15, %v2036_v20 }
 0x74d   :  { %1715 = vmatmul.msk.f32.gmra.mxu3 %vm315_vm15, %v2041_v28 }
 0x7aa   :  { %v953_v55 = vpop.f32.mrf.mxu1 }
 0x7ab   :  { %v954_v9 = vadd.f32 %v953_v55, %v924_v50 }
 0x7ad   :  { %v963_v4 = vadd.f32 %v1801_v56, %v954_v9  ;;  %v1723_v9 = vld [vmem:[%s2149_s11 + $0x8] sm:$0xff] }
 0x7ae   :  { %1351 = vmatpush.msra.mxu3 %v1723_v9 }
 0x7b0   :  { %v1005_v58 = vpop.f32.mrf.mxu3 }
 0x7b1   :  { %v1006_v5 = vadd.f32 %v1005_v58, %v982_v57 }
 0x7b2   :  { %v956_v61 = vpop.f32.mrf.mxu1 }
 0x7b3   :  { %v957_v62 = vadd.f32 %v956_v61, %v927_v60  ;;  %v1015_v13 = vadd.f32 %v1802_v6, %v1006_v5  ;;  %v1358_v5 = vld [vmem:[%s2172_s19 + $0x8] sm:$0xff] }
 0x7b5   :  { %v964_v63 = vadd.f32 %v1801_v56, %v957_v62 }
 0x7b7   :  { %1695 = vmatpush.xpose.msk.msrb.mxu0 %vm315_vm15, %v964_v63 }
 0x7b8   :  { %v1008_v3 = vpop.f32.mrf.mxu3 }
 0x7b9   :  { %v1009_v7 = vadd.f32 %v1008_v3, %v985_v52  ;;  %v1820_v3 = vld [vmem:[%s1868_s5] sm:$0xff]  ;;  %s1853_s5 = smov 29  }
 0x7ba   :  { %s2208_s3 = sld [smem:[%s2243_s0 + %s1853_s5]]  }
 0x7bb   :  { %v1016_v10 = vadd.f32 %v1802_v6, %v1009_v7  ;;  %1696 = vmatpush.xpose.msk.msrb.mxu0 %vm315_vm15, %v963_v4  ;;  %v1805_v6 = vld [vmem:[%s2158_s14] ss:$0 sm:$0xff] }
 0x7bd   :  { %1075 = vmatpush.msra.mxu1 %v1016_v10 }
 0x7be   :  { %1697 = vmatmul.msk.f32.vlgmr.msrb.gmra.mxu0 %vm315_vm15, %v900_v11  ;;  %v1440_v11 = vld [vmem:[%s1659_s9 + $0x18] sm:$0xff] }
 0x7bf   :  { %1150 = vmatpush.msra.mxu0 %v1700_v8  ;;  %1076 = vmatpush.msra.mxu1 %v1015_v13  ;;  %v1438_v13 = vld [vmem:[%s1659_s9 + $0x8] sm:$0xff] }
 0x7c0   :  { %v1132_v0 = vpop.f32.mrf.mxu3  ;;  %1461 = vmatpush.msrb.mxu3 %v1440_v11 }
 0x7c1   :  { %1252 = vmatpush.msrb.mxu0 %v1704_v12  ;;  %1176 = vmatpush.msrb.mxu1 %v1703_v23  ;;  %v1439_v12 = vld [vmem:[%s1659_s9 + $0x10] sm:$0xff] }
 0x7c2   :  { %1462 = vmatpush.msrb.mxu3 %v1439_v12 }
 0x7c4   :  { %1463 = vmatpush.msrb.mxu3 %v1438_v13 }
 0x7c6   :  { %1707 = vmatmul.msk.f32.vlgmr.msra.gmra.mxu0 %vm315_vm15, %v1919_v59 }
 0x7c7   :  { %1377 = vmatpush.msra.mxu0 %v1359_v1 }
 0x7c8   :  { %v1231_v38 = vpop.f32.mrf.mxu3 }
 0x7c9   :  { %1378 = vmatpush.msra.mxu0 %v1358_v5 }
 0x7ce   :  { %1716 = vmatmul.msk.f32.vlgmr.msrb.gmra.mxu0 %vm315_vm15, %v2105_v44 }
 0x7d0   :  { %v1234_v40 = vpop.f32.mrf.mxu3 }
 0x7d6   :  { %1717 = vmatmul.msk.f32.gmra.mxu0 %vm315_vm15, %v2117_v48 }
 0x83b   :  { %v1043_v14 = vpop.f32.mrf.mxu0 }
 0x83c   :  { %v1046_v15 = vmul.f32 0.35355338, %v1043_v14  ;;  %v1437_v14 = vld [vmem:[%s1659_s9] sm:$0xff] }
 0x83d   :  { %1464 = vmatpush.msrb.mxu3 %v1437_v14 }
 0x83e   :  { %v1047_v16 = vsel %vm346_vm0, %v1046_v15, -inf }
 0x83f   :  { %1048 = vmax.xlane.f32.xlu0 %v1047_v16  ;;  %v1808_v16 = vld [vmem:[%s1658_s30] ss:$0 sm:$0xff] }
 0x843   :  { %v1152_v36 = vpop.f32.mrf.mxu0 }
 0x84b   :  { %v1254_v37 = vpop.f32.mrf.mxu0 }
 0x84c   :  { %v1255_v33 = vadd.f32 %v1254_v37, %v1231_v38 }
 0x853   :  { %v1257_v39 = vpop.f32.mrf.mxu0 }
 0x854   :  { %v1258_v31 = vadd.f32 %v1257_v39, %v1234_v40  ;;  %v1810_v39 = vld [vmem:[%s1662_s17] ss:$0 sm:$0xff] }
 0x8b2   :  { %v1049_v17 = vpop.xlane.xlu0 %1048 }
 0x8b3   :  { %v1050_v18 = vsub.f32 %v1046_v15, %v1049_v17  ;;  %v1473_v15 = vld [vmem:[%s2216_s13 + $0x18] sm:$0xff] }
 0x8b4   :  { %1493 = vmatpush.msrb.mxu0 %v1473_v15 }
 0x8b5   :  { %v1051_v19 = vmul.f32 1.442695, %v1050_v18  ;;  %v1807_v18 = vld [vmem:[%s2197_s26] ss:$0 sm:$0xff] }
 0x8b7   :  { %1812 = vpow2.f32 %v1051_v19 }
 0x8bd   :  { %v1813_v21 = vpop.eup %1812 }
 0x8be   :  { %v1053_v22 = vsel %vm346_vm0, %v1813_v21, 0.0 }
 0x8bf   :  { %1054 = vadd.xlane.f32.xlu1 %v1053_v22 }
 0x932   :  { %v1055_v26 = vpop.xlane.xlu1 %1054 }
 0x933   :  { %1814 = vrcp.f32 %v1055_v26 }
 0x939   :  { %v1815_v29 = vpop.eup %1814 }
 0x93a   :  { %v1057_v30 = vmul.f32 %v1815_v29, %v1813_v21  ;;  %v1472_v29 = vld [vmem:[%s2216_s13 + $0x10] sm:$0xff] }
 0x93b   :  { %1494 = vmatpush.msrb.mxu0 %v1472_v29 }
 0x93c   :  { %1698 = vmatmul.msk.f32.vlgmr.msra.gmra.mxu1 %vm346_vm0, %v1057_v30  ;;  %v1471_v30 = vld [vmem:[%s2216_s13 + $0x8] sm:$0xff] }
 0x93d   :  { %1495 = vmatpush.msrb.mxu0 %v1471_v30 }
 0x93f   :  { %1496 = vmatpush.msrb.mxu0 %v1470_v32 }
 0x944   :  { %1709 = vmatmul.msk.f32.vlgmr.msrb.gmra.mxu1 %vm315_vm15, %v2036_v20  ;;  %v1804_v20 = vld [vmem:[%s2111_s7 + $0x1] ss:$0 sm:$0xff] }
 0x945   :  { %v1266_v41 = vadd.f32 %v1804_v20, %v1258_v31  ;;  %v1265_v53 = vadd.f32 %v1804_v20, %v1255_v33 }
 0x94c   :  { %1710 = vmatmul.msk.f32.gmra.mxu1 %vm315_vm15, %v2041_v28 }
 0x9b9   :  { %v1078_v42 = vpop.f32.mrf.mxu1 }
 0x9ba   :  { %1699 = vmatmul.msk.f32.vlgmr.msra.gmra.mxu2 %vm315_vm15, %v1078_v42 }
 0x9bb   :  { %1325 = vmatpush.msra.mxu2 %v1266_v41 }
 0x9bd   :  { %1326 = vmatpush.msra.mxu2 %v1265_v53 }
 0x9c1   :  { %v1178_v54 = vpop.f32.mrf.mxu1 }
 0x9c2   :  { %1711 = vmatmul.msk.f32.vlgmr.msrb.gmra.mxu2 %vm315_vm15, %v2105_v44  ;;  %v1153_v44 = vadd.f32 %v1152_v36, %v1132_v0  ;;  %v1809_v36 = vld [vmem:[%s2208_s3] ss:$0 sm:$0xff] }
 0x9c3   :  { %1727 = vmatpush.msk.msrb.mxu2 %vm286_vm13, %v1408_v2  ;;  %vm1445_vm13 = vcmask 261120  }
 0x9c4   :  { %v1160_v50 = vadd.f32 %v1803_v47, %v1153_v44  ;;  %v1811_v47 = vld [vmem:[%s1664_s24] ss:$0 sm:$0xff] }
 0x9c9   :  { %v1181_v27 = vpop.f32.mrf.mxu1 }
 0x9ca   :  { %1712 = vmatmul.msk.f32.gmra.mxu2 %vm315_vm15, %v2117_v48 }
 0xa3d   :  { %v1102_v28 = vpop.f32.mrf.mxu2 }
 0xa3e   :  { %v1105_v7 = vadd.f32 %v1805_v6, %v1102_v28  ;;  %v1599_v28 = vld [vmem:[%s1663_s20 + $0x18] sm:$0xff] }
 0xa45   :  { %v1201_v25 = vpop.f32.mrf.mxu2 }
 0xa46   :  { %v1202_v45 = vadd.f32 %v1201_v25, %v1178_v54 }
 0xa48   :  { %v1212_v48 = vadd.f32 %v1806_v35, %v1202_v45 }
 0xa4d   :  { %v1204_v34 = vpop.f32.mrf.mxu2 }
 0xa4e   :  { %v1205_v43 = vadd.f32 %v1204_v34, %v1181_v27  ;;  %v1598_v34 = vld [vmem:[%s1663_s20 + $0x10] sm:$0xff] }
 0xa50   :  { %v1213_v46 = vadd.f32 %v1806_v35, %v1205_v43  ;;  %v1597_v35 = vld [vmem:[%s1663_s20 + $0x8] sm:$0xff]  ;;  %v1596_v43 = vld [vmem:[%s1663_s20] sm:$0xff] }
 0xa52   :  { %1719 = vmatpush.xpose.msk.msra.mxu1 %vm315_vm15, %v1213_v46 }
 0xa56   :  { %1720 = vmatpush.xpose.msk.msra.mxu1 %vm315_vm15, %v1212_v48 }
 0xa59   :  { %1721 = vmatmul.msk.f32.vlgmr.msra.gmra.mxu1 %vm315_vm15, %v1160_v50 }
 0xa5a   :  { %1398 = vmatpush.msrb.mxu1 %v1357_v49 }
 0xa5c   :  { %1516 = vmatpush.msra.mxu1 %v1440_v11 }
 0xa5e   :  { %1517 = vmatpush.msra.mxu1 %v1439_v12 }
 0xa60   :  { %1518 = vmatpush.msra.mxu1 %v1438_v13 }
 0xa61   :  { %1726 = vmatmul.msk.f32.vlgmr.msrb.gmra.mxu1 %vm315_vm15, %v1919_v59 }
 0xa62   :  { %1519 = vmatpush.msra.mxu1 %v1437_v14 }
 0xa64   :  { %1619 = vmatpush.msrb.mxu1 %v1599_v28 }
 0xa66   :  { %1620 = vmatpush.msrb.mxu1 %v1598_v34 }
 0xa68   :  { %1621 = vmatpush.msrb.mxu1 %v1597_v35 }
 0xa6a   :  { %1622 = vmatpush.msrb.mxu1 %v1596_v43 }
 0xad6   :  { %v1293_v51 = vpop.f32.mrf.mxu1 }
 0xad7   :  { %v1296_v55 = vmul.f32 0.35355338, %v1293_v51 }
 0xad9   :  { %v1297_v57 = vsel %vm346_vm0, %v1296_v55, -inf }
 0xada   :  { %1298 = vmax.xlane.f32.xlu2 %v1297_v57 }
 0xade   :  { %v1400_v19 = vpop.f32.mrf.mxu1 }
 0xb4d   :  { %v1299_v58 = vpop.xlane.xlu2 %1298 }
 0xb4e   :  { %v1300_v60 = vsub.f32 %v1296_v55, %v1299_v58 }
 0xb50   :  { %v1301_v61 = vmul.f32 1.442695, %v1300_v60 }
 0xb52   :  { %1816 = vpow2.f32 %v1301_v61 }
 0xb58   :  { %v1817_v56 = vpop.eup %1816 }
 0xb59   :  { %v1303_v62 = vsel %vm346_vm0, %v1817_v56, 0.0 }
 0xb5a   :  { %1304 = vadd.xlane.f32.xlu2 %v1303_v62 }
 0xbcd   :  { %v1305_v63 = vpop.xlane.xlu2 %1304 }
 0xbce   :  { %1818 = vrcp.f32 %v1305_v63 }
 0xbd4   :  { %v1819_v59 = vpop.eup %1818 }
 0xbd5   :  { %v1307_v52 = vmul.f32 %v1819_v59, %v1817_v56 }
 0xbd7   :  { %1722 = vmatmul.msk.f32.vlgmr.msra.gmra.mxu2 %vm346_vm0, %v1307_v52 }
 0xbd8   :  { %1540 = vmatpush.msra.mxu2 %v1473_v15 }
 0xbda   :  { %1541 = vmatpush.msra.mxu2 %v1472_v29 }
 0xbdc   :  { %1542 = vmatpush.msra.mxu2 %v1471_v30 }
 0xbde   :  { %1543 = vmatpush.msra.mxu2 %v1470_v32 }
 0xbdf   :  { %1728 = vmatmul.msk.f32.vlgmr.msrb.gmra.mxu2 %vm282_vm14, %v1820_v3 }
 0xc5a   :  { %v1328_v4 = vpop.f32.mrf.mxu2 }
 0xc5b   :  { %1724 = vmatmul.msk.f32.vlgmr.msra.gmra.mxu3 %vm315_vm15, %v1328_v4 }
 0xc5c   :  { %1563 = vmatpush.msra.mxu3 %v1440_v11 }
 0xc5e   :  { %1564 = vmatpush.msra.mxu3 %v1439_v12 }
 0xc60   :  { %1565 = vmatpush.msra.mxu3 %v1438_v13 }
 0xc62   :  { %1566 = vmatpush.msra.mxu3 %v1437_v14  ;;  %v1433_v17 = vpop.f32.mrf.mxu2 }
 0xc63   :  { %v1434_v23 = vadd.f32 %v1808_v16, %v1433_v17 }
 0xcde   :  { %v1353_v8 = vpop.f32.mrf.mxu3 }
 0xcdf   :  { %v1356_v10 = vadd.f32 %v1353_v8, %v1105_v7 }
 0xce1   :  { %1725 = vmatmul.msk.f32.vlgmr.msra.gmra.mxu0 %vm346_vm0, %v1356_v10 }
 0xce2   :  { %1587 = vmatpush.msra.mxu0 %v1473_v15 }
 0xce4   :  { %1588 = vmatpush.msra.mxu0 %v1472_v29 }
 0xce6   :  { %1589 = vmatpush.msra.mxu0 %v1471_v30 }
 0xce8   :  { %1590 = vmatpush.msra.mxu0 %v1470_v32 }
 0xd5e   :  { %v1380_v21 = vpop.f32.mrf.mxu0 }
 0xd5f   :  { %v1401_v22 = vadd.f32 %v1400_v19, %v1380_v21 }
 0xd61   :  { %v1407_v24 = vadd.f32 %v1807_v18, %v1401_v22 }
 0xd63   :  { %v1436_v26 = vadd.f32 %v1434_v23, %v1407_v24 }
 0xd65   :  { %1729 = vmatmul.msk.f32.vlgmr.msrb.gmra.mxu3 %vm1445_vm13, %v1436_v26 }
 0xde8   :  { %v1466_v0 = vpop.f32.mrf.mxu3 }
 0xde9   :  { %v1467_v37 = vadd.f32 %v1809_v36, %v1466_v0 }
 0xdeb   :  { %v1469_v38 = vadd.f32 %v1467_v37, %v1436_v26 }
 0xded   :  { %1730 = vmatmul.msk.f32.vlgmr.msrb.gmra.mxu0 %vm1445_vm13, %v1469_v38 }
 0xe6a   :  { %v1498_v40 = vpop.f32.mrf.mxu0 }
 0xe6b   :  { %v1499_v31 = vadd.f32 %v1810_v39, %v1498_v40 }
 0xe6d   :  { %1731 = vmatmul.msk.f32.vlgmr.msra.gmra.mxu1 %vm1445_vm13, %v1499_v31 }
 0xeea   :  { %v1521_v33 = vpop.f32.mrf.mxu1 }
 0xeeb   :  { %v1522_v20 = vadd.f32 %v1809_v36, %v1521_v33 }
 0xeed   :  { %v1524_v41 = vadd.f32 %v1522_v20, %v1499_v31 }
 0xeef   :  { %1732 = vmatmul.msk.f32.vlgmr.msra.gmra.mxu2 %vm1445_vm13, %v1524_v41 }
 0xf72   :  { %v1545_v42 = vpop.f32.mrf.mxu2 }
 0xf73   :  { %v1546_v53 = vadd.f32 %v1810_v39, %v1545_v42 }
 0xf75   :  { %1733 = vmatmul.msk.f32.vlgmr.msra.gmra.mxu3 %vm1445_vm13, %v1546_v53 }
 0xff8   :  { %v1568_v54 = vpop.f32.mrf.mxu3 }
 0xff9   :  { %v1569_v25 = vadd.f32 %v1809_v36, %v1568_v54 }
 0xffb   :  { %v1571_v27 = vadd.f32 %v1569_v25, %v1546_v53 }
 0xffd   :  { %1734 = vmatmul.msk.f32.vlgmr.msra.gmra.mxu0 %vm1445_vm13, %v1571_v27 }
0x107a   :  { %v1592_v45 = vpop.f32.mrf.mxu0 }
0x107b   :  { %v1593_v46 = vadd.f32 %v1810_v39, %v1592_v45 }
0x107d   :  { %v1595_v44 = vmax.f32 %v1593_v46, 0.0 }
0x107f   :  { %1735 = vmatmul.msk.f32.vlgmr.msrb.gmra.mxu1 %vm1445_vm13, %v1595_v44 }
0x10fc   :  { %v1624_v48 = vpop.f32.mrf.mxu1 }
0x10fd   :  { %v1625_v49 = vadd.f32 %v1811_v47, %v1624_v48 }
0x10ff   :  { %1627 = vst [vmem:[%s1665_s28] sm:$0xff] %v1625_v49 }

</bundles_post_ra>
